<compile_context>
chip_gen: v6e
topology: v6e:2x2x1
jax: 0.10.0
libtpu: 0.0.40
codegen_flags: <defaults>
</compile_context>

<pallas_src>
from functools import partial

import jax
import jax.numpy as jnp
from jax import lax
from jax.experimental import pallas as pl
from jax.experimental.pallas import tpu as pltpu

_LANE = 128      # lane width
_SUBLANE = 8     # f32 sublanes
_MIB = 1 << 20


def _round_up(n, m):
    return ((n + m - 1) // m) * m


def _pad_to(a, shape):
    return jnp.pad(a, [(0, s - d) for d, s in zip(a.shape, shape)])


def _vmem_limit(nbytes):
    # double-buffer headroom, floor 16 MiB, cap 56 MiB (v7x-safe).
    return int(min(max(2 * nbytes + 4 * _MIB, 16 * _MIB), 56 * _MIB))


# ---------------------------------------------------------------------------
# Phase 1: gi = relu(x @ W1 + b1) @ W_ih + b_ih   (batched over M = T*B rows)
# ---------------------------------------------------------------------------
def _input_proj_kernel(x_ref, w1_ref, b1_ref, wih_ref, bih_ref, gi_ref):
    f32 = jnp.float32
    x1 = jnp.dot(x_ref[...], w1_ref[...], preferred_element_type=f32)
    x1 = jnp.maximum(x1 + b1_ref[...], 0.0)
    gi_ref[...] = (jnp.dot(x1.astype(jnp.bfloat16), wih_ref[...],
                           preferred_element_type=f32) + bih_ref[...])


# ---------------------------------------------------------------------------
# Phase 2: serial GRU recurrence.  Per step only gh = h @ W_hh + gate math.
# Tc timesteps per grid iteration; h carried in persistent VMEM scratch.
# ---------------------------------------------------------------------------
def _gru_recurrence_kernel(gi_ref, h0_ref, whh_ref, bhh_ref, hseq_ref, hcar_ref):
    Hp = h0_ref.shape[-1]
    Tc = gi_ref.shape[0]
    f32, bf16 = jnp.float32, jnp.bfloat16

    @pl.when(pl.program_id(0) == 0)
    def _():
        hcar_ref[...] = h0_ref[...]

    whh = whh_ref[...]          # resident (constant index_map), loaded once/chunk
    bhh = bhh_ref[...]

    def step(s, h):
        gi = gi_ref[s]                                           # (Bp, 3Hp) f32
        gh = jnp.dot(h.astype(bf16), whh, preferred_element_type=f32) + bhh
        r = jax.nn.sigmoid(gi[:, :Hp] + gh[:, :Hp])              # lane-aligned slices
        z = jax.nn.sigmoid(gi[:, Hp:2 * Hp] + gh[:, Hp:2 * Hp])
        n = jnp.tanh(gi[:, 2 * Hp:] + r * gh[:, 2 * Hp:])
        h_new = n + z * (h - n)                                  # == (1-z)*n + z*h
        hseq_ref[s] = h_new
        return h_new

    hcar_ref[...] = lax.fori_loop(0, Tc, step, hcar_ref[...], unroll=True)


# ---------------------------------------------------------------------------
# Phase 3: q = h_seq @ W2 + b2   (batched over M = T*B rows)
# ---------------------------------------------------------------------------
def _fc2_kernel(h_ref, w2_ref, b2_ref, q_ref):
    q_ref[...] = (jnp.dot(h_ref[...].astype(jnp.bfloat16), w2_ref[...],
                          preferred_element_type=jnp.float32) + b2_ref[...])


# ---------------------------------------------------------------------------
# Parameter construction / packing
# ---------------------------------------------------------------------------
def init_params(key, state_dim, action_dim, hidden_dim):
    """PyTorch-style uniform(-1/sqrt(fan), 1/sqrt(fan)) init.
    Weights stored (in_features, out_features); GRU gates in (r, z, n) order."""
    ks = jax.random.split(key, 8)

    def u(k, shape, fan):
        bound = 1.0 / jnp.sqrt(jnp.float32(fan))
        return jax.random.uniform(k, shape, jnp.float32, -bound, bound)

    return {
        "w1":   u(ks[0], (state_dim, hidden_dim), state_dim),
        "b1":   u(ks[1], (1, hidden_dim), state_dim),
        "w_ih": u(ks[2], (hidden_dim, 3 * hidden_dim), hidden_dim),
        "b_ih": u(ks[3], (1, 3 * hidden_dim), hidden_dim),
        "w_hh": u(ks[4], (hidden_dim, 3 * hidden_dim), hidden_dim),
        "b_hh": u(ks[5], (1, 3 * hidden_dim), hidden_dim),
        "w2":   u(ks[6], (hidden_dim, action_dim), hidden_dim),
        "b2":   u(ks[7], (1, action_dim), hidden_dim),
    }


def pack_params(p):
    """Pad feature dims to 128 lanes, pad each (r,z,n) gate block to Hp lanes,
    cast weight matrices to bf16 (biases stay f32)."""
    S, H = p["w1"].shape
    A = p["w2"].shape[1]
    Sp, Hp, Ap = (_round_up(d, _LANE) for d in (S, H, A))
    bf16 = jnp.bfloat16

    def pad_gates(w, rows_p):
        # (in, 3H) -> (rows_p, 3Hp): each gate block (r, z, n) padded to Hp lanes
        return jnp.concatenate(
            [_pad_to(w[:, g * H:(g + 1) * H], (rows_p, Hp)) for g in range(3)],
            axis=1)

    return {
        "w1":   _pad_to(p["w1"], (Sp, Hp)).astype(bf16),
        "b1":   _pad_to(p["b1"], (1, Hp)),
        "w_ih": pad_gates(p["w_ih"], Hp).astype(bf16),
        "b_ih": pad_gates(p["b_ih"], 1),
        "w_hh": pad_gates(p["w_hh"], Hp).astype(bf16),
        "b_hh": pad_gates(p["b_hh"], 1),
        "w2":   _pad_to(p["w2"], (Hp, Ap)).astype(bf16),
        "b2":   _pad_to(p["b2"], (1, Ap)),
    }


# ---------------------------------------------------------------------------
# Wrappers
# ---------------------------------------------------------------------------
@partial(jax.jit, static_argnames=("action_dim",))
def rnn_rollout(x_seq, h0, packed, *, action_dim):
    """x_seq: (T, B, state_dim) f32, h0: (B, hidden_dim) f32.
    Returns (q: (T, B, action_dim), h_T: (B, hidden_dim))."""
    T, B, S = x_seq.shape
    H = h0.shape[1]
    Sp, Hp = packed["w1"].shape
    Ap = packed["w2"].shape[1]
    Bp = _round_up(max(B, _SUBLANE), _SUBLANE)

    # timestep chunking for the serial recurrence
    Tc = min(T, 16)
    Tp = _round_up(T, Tc)
    n_chunks = Tp // Tc

    # batched-M tiling for the two non-recurrent phases
    M = Tp * Bp
    tm = 512 if M >= 512 else _round_up(M, _SUBLANE)
    Mp = _round_up(M, tm)

    const2 = lambda m: (0, 0)

    # ---- phase 1: input-side projections, one big matmul over T*B rows ----
    x_pad = _pad_to(x_seq.astype(jnp.bfloat16), (Tp, Bp, Sp))   # bf16 on host
    x_flat = _pad_to(x_pad.reshape(Tp * Bp, Sp), (Mp, Sp))

    gi_flat = pl.pallas_call(
        _input_proj_kernel,
        grid=(Mp // tm,),
        out_shape=jax.ShapeDtypeStruct((Mp, 3 * Hp), jnp.float32),
        in_specs=[
            pl.BlockSpec((tm, Sp), lambda m: (m, 0)),
            pl.BlockSpec((Sp, Hp), const2),
            pl.BlockSpec((1, Hp), const2),
            pl.BlockSpec((Hp, 3 * Hp), const2),
            pl.BlockSpec((1, 3 * Hp), const2),
        ],
        out_specs=pl.BlockSpec((tm, 3 * Hp), lambda m: (m, 0)),
        compiler_params=pltpu.CompilerParams(
            dimension_semantics=("parallel",),
            vmem_limit_bytes=_vmem_limit(
                tm * Sp * 2 + Sp * Hp * 2 + Hp * 3 * Hp * 2 + tm * 3 * Hp * 4),
        ),
    )(x_flat, packed["w1"], packed["b1"], packed["w_ih"], packed["b_ih"])

    gi_seq = gi_flat[:Tp * Bp].reshape(Tp, Bp, 3 * Hp)

    # ---- phase 2: serial GRU recurrence (only gh + gate math per step) ----
    h0_pad = _pad_to(h0.astype(jnp.float32), (Bp, Hp))

    h_seq = pl.pallas_call(
        _gru_recurrence_kernel,
        grid=(n_chunks,),
        out_shape=jax.ShapeDtypeStruct((Tp, Bp, Hp), jnp.float32),
        in_specs=[
            pl.BlockSpec((Tc, Bp, 3 * Hp), lambda c: (c, 0, 0)),  # gi stream
            pl.BlockSpec((Bp, Hp), const2),                       # h0 (read at c==0)
            pl.BlockSpec((Hp, 3 * Hp), const2),                   # W_hh resident
            pl.BlockSpec((1, 3 * Hp), const2),                    # b_hh resident
        ],
        out_specs=pl.BlockSpec((Tc, Bp, Hp), lambda c: (c, 0, 0)),
        scratch_shapes=[pltpu.VMEM((Bp, Hp), jnp.float32)],       # carried h
        compiler_params=pltpu.CompilerParams(
            dimension_semantics=("arbitrary",),                   # serial over T
            vmem_limit_bytes=_vmem_limit(
                2 * Tc * Bp * 3 * Hp * 4 + 2 * Tc * Bp * Hp * 4
                + Hp * 3 * Hp * 2 + 3 * Bp * Hp * 4),
        ),
        # For very large H on v7x (64 MiB VMEM): single-buffer W_hh
        # (pipeline_mode=pl.Buffered(1)) or K-tile the W_hh contraction.
    )(gi_seq, h0_pad, packed["w_hh"], packed["b_hh"])

    # ---- phase 3: fc2 deferred out of the loop, one big matmul ------------
    h_flat = _pad_to(h_seq.reshape(Tp * Bp, Hp), (Mp, Hp))
    q_flat = pl.pallas_call(
        _fc2_kernel,
        grid=(Mp // tm,),
        out_shape=jax.ShapeDtypeStruct((Mp, Ap), jnp.float32),
        in_specs=[
            pl.BlockSpec((tm, Hp), lambda m: (m, 0)),
            pl.BlockSpec((Hp, Ap), const2),
            pl.BlockSpec((1, Ap), const2),
        ],
        out_specs=pl.BlockSpec((tm, Ap), lambda m: (m, 0)),
        compiler_params=pltpu.CompilerParams(
            dimension_semantics=("parallel",),
            vmem_limit_bytes=_vmem_limit(tm * Hp * 4 + Hp * Ap * 2 + tm * Ap * 4),
        ),
    )(h_flat, packed["w2"], packed["b2"])

    q_seq = q_flat[:Tp * Bp].reshape(Tp, Bp, Ap)[:T, :B, :action_dim]
    h_T = h_seq[T - 1, :B, :H]
    return q_seq, h_T


def rnn_forward(x, h, packed, *, action_dim):
    """Single-step forward with the exact semantics of the PyTorch RNN.forward."""
    q_seq, h_new = rnn_rollout(x[None], h, packed, action_dim=action_dim)
    return q_seq[0], h_new


# ---------------------------------------------------------------------------
# Pure-JAX reference (same bf16-weight / f32-accumulate numerics)
# ---------------------------------------------------------------------------
def rnn_rollout_ref(x_seq, h0, params):
    H = h0.shape[1]

    def dot(a, b):
        return jnp.dot(a.astype(jnp.bfloat16), b.astype(jnp.bfloat16),
                       preferred_element_type=jnp.float32)

    h = h0.astype(jnp.float32)
    qs = []
    for t in range(x_seq.shape[0]):
        x1 = jnp.maximum(dot(x_seq[t], params["w1"]) + params["b1"], 0.0)
        gi = dot(x1, params["w_ih"]) + params["b_ih"]
        gh = dot(h, params["w_hh"]) + params["b_hh"]
        r = jax.nn.sigmoid(gi[:, :H] + gh[:, :H])
        z = jax.nn.sigmoid(gi[:, H:2 * H] + gh[:, H:2 * H])
        n = jnp.tanh(gi[:, 2 * H:] + r * gh[:, 2 * H:])
        h = (1.0 - z) * n + z * h
        qs.append(dot(h, params["w2"]) + params["b2"])
    return jnp.stack(qs), h


if __name__ == "__main__":
    state_dim, action_dim, hidden_dim = 16, 4, 32
    batch, T = 8, 8

    key = jax.random.PRNGKey(0)
    k_x, k_h, k_p = jax.random.split(key, 3)
    x_seq = jax.random.normal(k_x, (T, batch, state_dim), jnp.float32)
    h0 = jax.random.normal(k_h, (batch, hidden_dim), jnp.float32)

    params = init_params(k_p, state_dim, action_dim, hidden_dim)
    packed = pack_params(params)

    # multi-step rollout: batched input/output projections + in-kernel recurrence
    q_seq, h_T = rnn_rollout(x_seq, h0, packed, action_dim=action_dim)
    jax.block_until_ready((q_seq, h_T))

    q_ref, h_ref_T = rnn_rollout_ref(x_seq, h0, params)
    assert q_seq.shape == (T, batch, action_dim) and h_T.shape == (batch, hidden_dim)
    assert jnp.allclose(q_seq, q_ref, atol=5e-3, rtol=5e-3), "q mismatch vs reference"
    assert jnp.allclose(h_T, h_ref_T, atol=5e-3, rtol=5e-3), "h mismatch vs reference"

    # single-step call (exact semantics of the PyTorch module's forward)
    q1, h1 = rnn_forward(x_seq[0], h0, packed, action_dim=action_dim)
    jax.block_until_ready((q1, h1))
    q1_ref, h1_ref = rnn_rollout_ref(x_seq[:1], h0, params)
    assert jnp.allclose(q1, q1_ref[0], atol=5e-3, rtol=5e-3), "single-step q mismatch"
    assert jnp.allclose(h1, h1_ref, atol=5e-3, rtol=5e-3), "single-step h mismatch"

    print("KERNEL_OK")
</pallas_src>

<mosaic_0001>
module attributes {stable_mosaic.version = 11 : i64} {
  func.func @_input_proj_kernel(%arg0: i32, %arg1: memref<64x128xbf16, #tpu.memory_space<vmem>>, %arg2: memref<128x128xbf16, #tpu.memory_space<vmem>>, %arg3: memref<1x128xf32, #tpu.memory_space<vmem>>, %arg4: memref<128x384xbf16, #tpu.memory_space<vmem>>, %arg5: memref<1x384xf32, #tpu.memory_space<vmem>>, %arg6: memref<64x384xf32, #tpu.memory_space<vmem>>) attributes {dimension_semantics = [#tpu.dimension_semantics<parallel>], iteration_bounds = array<i64: 1>, scalar_prefetch = 0 : i64, scratch_operands = 0 : i64, tpu.core_type = #tpu.core_type<tc>, window_params = [{transform_indices = @transform_0, window_bounds = array<i64: 64, 128>}, {pipeline_mode = #tpu.pipeline_mode<synchronous>, transform_indices = @transform_1, window_bounds = array<i64: 128, 128>}, {pipeline_mode = #tpu.pipeline_mode<synchronous>, transform_indices = @transform_2, window_bounds = array<i64: 1, 128>}, {pipeline_mode = #tpu.pipeline_mode<synchronous>, transform_indices = @transform_3, window_bounds = array<i64: 128, 384>}, {pipeline_mode = #tpu.pipeline_mode<synchronous>, transform_indices = @transform_4, window_bounds = array<i64: 1, 384>}, {transform_indices = @transform_5, window_bounds = array<i64: 64, 384>}]} {
    %c0 = arith.constant 0 : index
    %c0_0 = arith.constant 0 : index
    %0 = vector.load %arg1[%c0, %c0_0] : memref<64x128xbf16, #tpu.memory_space<vmem>>, vector<64x128xbf16>
    %c0_1 = arith.constant 0 : index
    %c0_2 = arith.constant 0 : index
    %1 = vector.load %arg2[%c0_1, %c0_2] : memref<128x128xbf16, #tpu.memory_space<vmem>>, vector<128x128xbf16>
    %cst = arith.constant dense<0.000000e+00> : vector<64x128xf32>
    %2 = tpu.matmul %0, %1, %cst {dimension_numbers = #tpu.dot_dimension_numbers<[1], [0], [0], [1], [0, 0, 1, 1], [], []>} : vector<64x128xbf16>, vector<128x128xbf16>, vector<64x128xf32> -> vector<64x128xf32>
    %c0_3 = arith.constant 0 : index
    %c0_4 = arith.constant 0 : index
    %3 = vector.load %arg3[%c0_3, %c0_4] : memref<1x128xf32, #tpu.memory_space<vmem>>, vector<1x128xf32>
    %4 = vector.broadcast %3 : vector<1x128xf32> to vector<64x128xf32>
    %5 = arith.addf %2, %4 : vector<64x128xf32>
    %cst_5 = arith.constant 0.000000e+00 : f32
    %6 = vector.broadcast %cst_5 : f32 to vector<64x128xf32>
    %7 = arith.maximumf %5, %6 : vector<64x128xf32>
    %8 = arith.truncf %7 : vector<64x128xf32> to vector<64x128xbf16>
    %c0_6 = arith.constant 0 : index
    %c0_7 = arith.constant 0 : index
    %9 = vector.load %arg4[%c0_6, %c0_7] : memref<128x384xbf16, #tpu.memory_space<vmem>>, vector<128x384xbf16>
    %cst_8 = arith.constant dense<0.000000e+00> : vector<64x384xf32>
    %10 = tpu.matmul %8, %9, %cst_8 {dimension_numbers = #tpu.dot_dimension_numbers<[1], [0], [0], [1], [0, 0, 1, 1], [], []>} : vector<64x128xbf16>, vector<128x384xbf16>, vector<64x384xf32> -> vector<64x384xf32>
    %c0_9 = arith.constant 0 : index
    %c0_10 = arith.constant 0 : index
    %11 = vector.load %arg5[%c0_9, %c0_10] : memref<1x384xf32, #tpu.memory_space<vmem>>, vector<1x384xf32>
    %12 = vector.broadcast %11 : vector<1x384xf32> to vector<64x384xf32>
    %13 = arith.addf %10, %12 : vector<64x384xf32>
    %c0_11 = arith.constant 0 : index
    %c0_12 = arith.constant 0 : index
    %14 = vector.load %arg6[%c0_11, %c0_12] : memref<64x384xf32, #tpu.memory_space<vmem>>, vector<64x384xf32>
    tpu.vector_store %arg6[%c0_11, %c0_12], %13 {strides = array<i32>} : memref<64x384xf32, #tpu.memory_space<vmem>>, vector<64x384xf32>,
    return
  }
  func.func @transform_0(%arg0: i32) -> (i32, i32) {
    %c0_i32 = arith.constant 0 : i32
    %c0_i32_0 = arith.constant 0 : i32
    return %arg0, %c0_i32 : i32, i32
  }
  func.func @transform_1(%arg0: i32) -> (i32, i32) {
    %c0_i32 = arith.constant 0 : i32
    %c0_i32_0 = arith.constant 0 : i32
    %c0_i32_1 = arith.constant 0 : i32
    return %c0_i32, %c0_i32_0 : i32, i32
  }
  func.func @transform_2(%arg0: i32) -> (i32, i32) {
    %c0_i32 = arith.constant 0 : i32
    %c0_i32_0 = arith.constant 0 : i32
    %c0_i32_1 = arith.constant 0 : i32
    return %c0_i32, %c0_i32_0 : i32, i32
  }
  func.func @transform_3(%arg0: i32) -> (i32, i32) {
    %c0_i32 = arith.constant 0 : i32
    %c0_i32_0 = arith.constant 0 : i32
    %c0_i32_1 = arith.constant 0 : i32
    return %c0_i32, %c0_i32_0 : i32, i32
  }
  func.func @transform_4(%arg0: i32) -> (i32, i32) {
    %c0_i32 = arith.constant 0 : i32
    %c0_i32_0 = arith.constant 0 : i32
    %c0_i32_1 = arith.constant 0 : i32
    return %c0_i32, %c0_i32_0 : i32, i32
  }
  func.func @transform_5(%arg0: i32) -> (i32, i32) {
    %c0_i32 = arith.constant 0 : i32
    %c0_i32_0 = arith.constant 0 : i32
    return %arg0, %c0_i32 : i32, i32
  }
}

module attributes {stable_mosaic.version = 11 : i64} {
  func.func @_fc2_kernel(%arg0: i32, %arg1: memref<64x128xf32, #tpu.memory_space<vmem>>, %arg2: memref<128x128xbf16, #tpu.memory_space<vmem>>, %arg3: memref<1x128xf32, #tpu.memory_space<vmem>>, %arg4: memref<64x128xf32, #tpu.memory_space<vmem>>) attributes {dimension_semantics = [#tpu.dimension_semantics<parallel>], iteration_bounds = array<i64: 1>, scalar_prefetch = 0 : i64, scratch_operands = 0 : i64, tpu.core_type = #tpu.core_type<tc>, window_params = [{transform_indices = @transform_0, window_bounds = array<i64: 64, 128>}, {pipeline_mode = #tpu.pipeline_mode<synchronous>, transform_indices = @transform_1, window_bounds = array<i64: 128, 128>}, {pipeline_mode = #tpu.pipeline_mode<synchronous>, transform_indices = @transform_2, window_bounds = array<i64: 1, 128>}, {transform_indices = @transform_3, window_bounds = array<i64: 64, 128>}]} {
    %c0 = arith.constant 0 : index
    %c0_0 = arith.constant 0 : index
    %0 = vector.load %arg1[%c0, %c0_0] : memref<64x128xf32, #tpu.memory_space<vmem>>, vector<64x128xf32>
    %1 = arith.truncf %0 : vector<64x128xf32> to vector<64x128xbf16>
    %c0_1 = arith.constant 0 : index
    %c0_2 = arith.constant 0 : index
    %2 = vector.load %arg2[%c0_1, %c0_2] : memref<128x128xbf16, #tpu.memory_space<vmem>>, vector<128x128xbf16>
    %cst = arith.constant dense<0.000000e+00> : vector<64x128xf32>
    %3 = tpu.matmul %1, %2, %cst {dimension_numbers = #tpu.dot_dimension_numbers<[1], [0], [0], [1], [0, 0, 1, 1], [], []>} : vector<64x128xbf16>, vector<128x128xbf16>, vector<64x128xf32> -> vector<64x128xf32>
    %c0_3 = arith.constant 0 : index
    %c0_4 = arith.constant 0 : index
    %4 = vector.load %arg3[%c0_3, %c0_4] : memref<1x128xf32, #tpu.memory_space<vmem>>, vector<1x128xf32>
    %5 = vector.broadcast %4 : vector<1x128xf32> to vector<64x128xf32>
    %6 = arith.addf %3, %5 : vector<64x128xf32>
    %c0_5 = arith.constant 0 : index
    %c0_6 = arith.constant 0 : index
    %7 = vector.load %arg4[%c0_5, %c0_6] : memref<64x128xf32, #tpu.memory_space<vmem>>, vector<64x128xf32>
    tpu.vector_store %arg4[%c0_5, %c0_6], %6 {strides = array<i32>} : memref<64x128xf32, #tpu.memory_space<vmem>>, vector<64x128xf32>,
    return
  }
  func.func @transform_0(%arg0: i32) -> (i32, i32) {
    %c0_i32 = arith.constant 0 : i32
    %c0_i32_0 = arith.constant 0 : i32
    return %arg0, %c0_i32 : i32, i32
  }
  func.func @transform_1(%arg0: i32) -> (i32, i32) {
    %c0_i32 = arith.constant 0 : i32
    %c0_i32_0 = arith.constant 0 : i32
    %c0_i32_1 = arith.constant 0 : i32
    return %c0_i32, %c0_i32_0 : i32, i32
  }
  func.func @transform_2(%arg0: i32) -> (i32, i32) {
    %c0_i32 = arith.constant 0 : i32
    %c0_i32_0 = arith.constant 0 : i32
    %c0_i32_1 = arith.constant 0 : i32
    return %c0_i32, %c0_i32_0 : i32, i32
  }
  func.func @transform_3(%arg0: i32) -> (i32, i32) {
    %c0_i32 = arith.constant 0 : i32
    %c0_i32_0 = arith.constant 0 : i32
    return %arg0, %c0_i32 : i32, i32
  }
}

module attributes {stable_mosaic.version = 11 : i64} {
  func.func @_gru_recurrence_kernel(%arg0: i32, %arg1: memref<8x8x384xf32, #tpu.memory_space<vmem>>, %arg2: memref<8x128xf32, #tpu.memory_space<vmem>>, %arg3: memref<128x384xbf16, #tpu.memory_space<vmem>>, %arg4: memref<1x384xf32, #tpu.memory_space<vmem>>, %arg5: memref<8x8x128xf32, #tpu.memory_space<vmem>>, %arg6: memref<8x128xf32, #tpu.memory_space<vmem>>) attributes {dimension_semantics = [#tpu.dimension_semantics<arbitrary>], iteration_bounds = array<i64: 1>, scalar_prefetch = 0 : i64, scratch_operands = 1 : i64, tpu.core_type = #tpu.core_type<tc>, window_params = [{transform_indices = @transform_0, window_bounds = array<i64: 8, 8, 384>}, {pipeline_mode = #tpu.pipeline_mode<synchronous>, transform_indices = @transform_1, window_bounds = array<i64: 8, 128>}, {pipeline_mode = #tpu.pipeline_mode<synchronous>, transform_indices = @transform_2, window_bounds = array<i64: 128, 384>}, {pipeline_mode = #tpu.pipeline_mode<synchronous>, transform_indices = @transform_3, window_bounds = array<i64: 1, 384>}, {transform_indices = @transform_4, window_bounds = array<i64: 8, 8, 128>}]} {
    %c0_i32 = arith.constant 0 : i32
    %0 = arith.cmpi eq, %arg0, %c0_i32 : i32
    %1 = arith.extui %0 : i1 to i32
    %c0_i32_0 = arith.constant 0 : i32
    %2 = arith.cmpi ne, %1, %c0_i32_0 : i32
    scf.if %2 {
      %c0_64 = arith.constant 0 : index
      %c0_65 = arith.constant 0 : index
      %287 = vector.load %arg2[%c0_64, %c0_65] : memref<8x128xf32, #tpu.memory_space<vmem>>, vector<8x128xf32>
      %c0_66 = arith.constant 0 : index
      %c0_67 = arith.constant 0 : index
      %288 = vector.load %arg6[%c0_66, %c0_67] : memref<8x128xf32, #tpu.memory_space<vmem>>, vector<8x128xf32>
      tpu.vector_store %arg6[%c0_66, %c0_67], %287 {strides = array<i32>} : memref<8x128xf32, #tpu.memory_space<vmem>>, vector<8x128xf32>,
    } else {
    }
    %c0 = arith.constant 0 : index
    %c0_1 = arith.constant 0 : index
    %3 = vector.load %arg3[%c0, %c0_1] : memref<128x384xbf16, #tpu.memory_space<vmem>>, vector<128x384xbf16>
    %c0_2 = arith.constant 0 : index
    %c0_3 = arith.constant 0 : index
    %4 = vector.load %arg4[%c0_2, %c0_3] : memref<1x384xf32, #tpu.memory_space<vmem>>, vector<1x384xf32>
    %c0_4 = arith.constant 0 : index
    %c0_5 = arith.constant 0 : index
    %5 = vector.load %arg6[%c0_4, %c0_5] : memref<8x128xf32, #tpu.memory_space<vmem>>, vector<8x128xf32>
    %c0_i32_6 = arith.constant 0 : i32
    %6 = arith.index_cast %c0_i32_6 : i32 to index
    %c0_7 = arith.constant 0 : index
    %c0_8 = arith.constant 0 : index
    %7 = vector.load %arg1[%6, %c0_7, %c0_8] : memref<8x8x384xf32, #tpu.memory_space<vmem>>, vector<1x8x384xf32>
    %8 = vector.shape_cast %7 : vector<1x8x384xf32> to vector<8x384xf32>
    %9 = arith.truncf %5 : vector<8x128xf32> to vector<8x128xbf16>
    %cst = arith.constant dense<0.000000e+00> : vector<8x384xf32>
    %10 = tpu.matmul %9, %3, %cst {dimension_numbers = #tpu.dot_dimension_numbers<[1], [0], [0], [1], [0, 0, 1, 1], [], []>} : vector<8x128xbf16>, vector<128x384xbf16>, vector<8x384xf32> -> vector<8x384xf32>
    %11 = vector.broadcast %4 : vector<1x384xf32> to vector<8x384xf32>
    %12 = arith.addf %10, %11 : vector<8x384xf32>
    %13 = vector.extract_strided_slice %8 {offsets = [0, 0], sizes = [8, 128], strides = [1, 1]} : vector<8x384xf32> to vector<8x128xf32>
    %14 = vector.extract_strided_slice %12 {offsets = [0, 0], sizes = [8, 128], strides = [1, 1]} : vector<8x384xf32> to vector<8x128xf32>
    %15 = arith.addf %13, %14 : vector<8x128xf32>
    %16 = arith.negf %15 : vector<8x128xf32>
    %17 = math.exp %16 : vector<8x128xf32>
    %cst_9 = arith.constant 1.000000e+00 : f32
    %18 = vector.broadcast %cst_9 : f32 to vector<8x128xf32>
    %19 = arith.addf %18, %17 : vector<8x128xf32>
    %20 = arith.divf %18, %19 : vector<8x128xf32>
    %21 = vector.extract_strided_slice %8 {offsets = [0, 128], sizes = [8, 128], strides = [1, 1]} : vector<8x384xf32> to vector<8x128xf32>
    %22 = vector.extract_strided_slice %12 {offsets = [0, 128], sizes = [8, 128], strides = [1, 1]} : vector<8x384xf32> to vector<8x128xf32>
    %23 = arith.addf %21, %22 : vector<8x128xf32>
    %24 = arith.negf %23 : vector<8x128xf32>
    %25 = math.exp %24 : vector<8x128xf32>
    %cst_10 = arith.constant 1.000000e+00 : f32
    %26 = vector.broadcast %cst_10 : f32 to vector<8x128xf32>
    %27 = arith.addf %26, %25 : vector<8x128xf32>
    %28 = arith.divf %26, %27 : vector<8x128xf32>
    %29 = vector.extract_strided_slice %8 {offsets = [0, 256], sizes = [8, 128], strides = [1, 1]} : vector<8x384xf32> to vector<8x128xf32>
    %30 = vector.extract_strided_slice %12 {offsets = [0, 256], sizes = [8, 128], strides = [1, 1]} : vector<8x384xf32> to vector<8x128xf32>
    %31 = arith.mulf %20, %30 : vector<8x128xf32>
    %32 = arith.addf %29, %31 : vector<8x128xf32>
    %33 = math.tanh %32 : vector<8x128xf32>
    %34 = arith.subf %5, %33 : vector<8x128xf32>
    %35 = arith.mulf %28, %34 : vector<8x128xf32>
    %36 = arith.addf %33, %35 : vector<8x128xf32>
    %37 = arith.index_cast %c0_i32_6 : i32 to index
    %c0_11 = arith.constant 0 : index
    %c0_12 = arith.constant 0 : index
    %38 = vector.load %arg5[%37, %c0_11, %c0_12] : memref<8x8x128xf32, #tpu.memory_space<vmem>>, vector<1x8x128xf32>
    %39 = vector.shape_cast %38 : vector<1x8x128xf32> to vector<8x128xf32>
    %40 = vector.shape_cast %36 : vector<8x128xf32> to vector<1x8x128xf32>
    tpu.vector_store %arg5[%37, %c0_11, %c0_12], %40 {strides = array<i32>} : memref<8x8x128xf32, #tpu.memory_space<vmem>>, vector<1x8x128xf32>,
    %c1_i32 = arith.constant 1 : i32
    %41 = arith.index_cast %c1_i32 : i32 to index
    %c0_13 = arith.constant 0 : index
    %c0_14 = arith.constant 0 : index
    %42 = vector.load %arg1[%41, %c0_13, %c0_14] : memref<8x8x384xf32, #tpu.memory_space<vmem>>, vector<1x8x384xf32>
    %43 = vector.shape_cast %42 : vector<1x8x384xf32> to vector<8x384xf32>
    %44 = arith.truncf %36 : vector<8x128xf32> to vector<8x128xbf16>
    %cst_15 = arith.constant dense<0.000000e+00> : vector<8x384xf32>
    %45 = tpu.matmul %44, %3, %cst_15 {dimension_numbers = #tpu.dot_dimension_numbers<[1], [0], [0], [1], [0, 0, 1, 1], [], []>} : vector<8x128xbf16>, vector<128x384xbf16>, vector<8x384xf32> -> vector<8x384xf32>
    %46 = vector.broadcast %4 : vector<1x384xf32> to vector<8x384xf32>
    %47 = arith.addf %45, %46 : vector<8x384xf32>
    %48 = vector.extract_strided_slice %43 {offsets = [0, 0], sizes = [8, 128], strides = [1, 1]} : vector<8x384xf32> to vector<8x128xf32>
    %49 = vector.extract_strided_slice %47 {offsets = [0, 0], sizes = [8, 128], strides = [1, 1]} : vector<8x384xf32> to vector<8x128xf32>
    %50 = arith.addf %48, %49 : vector<8x128xf32>
    %51 = arith.negf %50 : vector<8x128xf32>
    %52 = math.exp %51 : vector<8x128xf32>
    %cst_16 = arith.constant 1.000000e+00 : f32
    %53 = vector.broadcast %cst_16 : f32 to vector<8x128xf32>
    %54 = arith.addf %53, %52 : vector<8x128xf32>
    %55 = arith.divf %53, %54 : vector<8x128xf32>
    %56 = vector.extract_strided_slice %43 {offsets = [0, 128], sizes = [8, 128], strides = [1, 1]} : vector<8x384xf32> to vector<8x128xf32>
    %57 = vector.extract_strided_slice %47 {offsets = [0, 128], sizes = [8, 128], strides = [1, 1]} : vector<8x384xf32> to vector<8x128xf32>
    %58 = arith.addf %56, %57 : vector<8x128xf32>
    %59 = arith.negf %58 : vector<8x128xf32>
    %60 = math.exp %59 : vector<8x128xf32>
    %cst_17 = arith.constant 1.000000e+00 : f32
    %61 = vector.broadcast %cst_17 : f32 to vector<8x128xf32>
    %62 = arith.addf %61, %60 : vector<8x128xf32>
    %63 = arith.divf %61, %62 : vector<8x128xf32>
    %64 = vector.extract_strided_slice %43 {offsets = [0, 256], sizes = [8, 128], strides = [1, 1]} : vector<8x384xf32> to vector<8x128xf32>
    %65 = vector.extract_strided_slice %47 {offsets = [0, 256], sizes = [8, 128], strides = [1, 1]} : vector<8x384xf32> to vector<8x128xf32>
    %66 = arith.mulf %55, %65 : vector<8x128xf32>
    %67 = arith.addf %64, %66 : vector<8x128xf32>
    %68 = math.tanh %67 : vector<8x128xf32>
    %69 = arith.subf %36, %68 : vector<8x128xf32>
    %70 = arith.mulf %63, %69 : vector<8x128xf32>
    %71 = arith.addf %68, %70 : vector<8x128xf32>
    %72 = arith.index_cast %c1_i32 : i32 to index
    %c0_18 = arith.constant 0 : index
    %c0_19 = arith.constant 0 : index
    %73 = vector.load %arg5[%72, %c0_18, %c0_19] : memref<8x8x128xf32, #tpu.memory_space<vmem>>, vector<1x8x128xf32>
    %74 = vector.shape_cast %73 : vector<1x8x128xf32> to vector<8x128xf32>
    %75 = vector.shape_cast %71 : vector<8x128xf32> to vector<1x8x128xf32>
    tpu.vector_store %arg5[%72, %c0_18, %c0_19], %75 {strides = array<i32>} : memref<8x8x128xf32, #tpu.memory_space<vmem>>, vector<1x8x128xf32>,
    %c2_i32 = arith.constant 2 : i32
    %76 = arith.index_cast %c2_i32 : i32 to index
    %c0_20 = arith.constant 0 : index
    %c0_21 = arith.constant 0 : index
    %77 = vector.load %arg1[%76, %c0_20, %c0_21] : memref<8x8x384xf32, #tpu.memory_space<vmem>>, vector<1x8x384xf32>
    %78 = vector.shape_cast %77 : vector<1x8x384xf32> to vector<8x384xf32>
    %79 = arith.truncf %71 : vector<8x128xf32> to vector<8x128xbf16>
    %cst_22 = arith.constant dense<0.000000e+00> : vector<8x384xf32>
    %80 = tpu.matmul %79, %3, %cst_22 {dimension_numbers = #tpu.dot_dimension_numbers<[1], [0], [0], [1], [0, 0, 1, 1], [], []>} : vector<8x128xbf16>, vector<128x384xbf16>, vector<8x384xf32> -> vector<8x384xf32>
    %81 = vector.broadcast %4 : vector<1x384xf32> to vector<8x384xf32>
    %82 = arith.addf %80, %81 : vector<8x384xf32>
    %83 = vector.extract_strided_slice %78 {offsets = [0, 0], sizes = [8, 128], strides = [1, 1]} : vector<8x384xf32> to vector<8x128xf32>
    %84 = vector.extract_strided_slice %82 {offsets = [0, 0], sizes = [8, 128], strides = [1, 1]} : vector<8x384xf32> to vector<8x128xf32>
    %85 = arith.addf %83, %84 : vector<8x128xf32>
    %86 = arith.negf %85 : vector<8x128xf32>
    %87 = math.exp %86 : vector<8x128xf32>
    %cst_23 = arith.constant 1.000000e+00 : f32
    %88 = vector.broadcast %cst_23 : f32 to vector<8x128xf32>
    %89 = arith.addf %88, %87 : vector<8x128xf32>
    %90 = arith.divf %88, %89 : vector<8x128xf32>
    %91 = vector.extract_strided_slice %78 {offsets = [0, 128], sizes = [8, 128], strides = [1, 1]} : vector<8x384xf32> to vector<8x128xf32>
    %92 = vector.extract_strided_slice %82 {offsets = [0, 128], sizes = [8, 128], strides = [1, 1]} : vector<8x384xf32> to vector<8x128xf32>
    %93 = arith.addf %91, %92 : vector<8x128xf32>
    %94 = arith.negf %93 : vector<8x128xf32>
    %95 = math.exp %94 : vector<8x128xf32>
    %cst_24 = arith.constant 1.000000e+00 : f32
    %96 = vector.broadcast %cst_24 : f32 to vector<8x128xf32>
    %97 = arith.addf %96, %95 : vector<8x128xf32>
    %98 = arith.divf %96, %97 : vector<8x128xf32>
    %99 = vector.extract_strided_slice %78 {offsets = [0, 256], sizes = [8, 128], strides = [1, 1]} : vector<8x384xf32> to vector<8x128xf32>
    %100 = vector.extract_strided_slice %82 {offsets = [0, 256], sizes = [8, 128], strides = [1, 1]} : vector<8x384xf32> to vector<8x128xf32>
    %101 = arith.mulf %90, %100 : vector<8x128xf32>
    %102 = arith.addf %99, %101 : vector<8x128xf32>
    %103 = math.tanh %102 : vector<8x128xf32>
    %104 = arith.subf %71, %103 : vector<8x128xf32>
    %105 = arith.mulf %98, %104 : vector<8x128xf32>
    %106 = arith.addf %103, %105 : vector<8x128xf32>
    %107 = arith.index_cast %c2_i32 : i32 to index
    %c0_25 = arith.constant 0 : index
    %c0_26 = arith.constant 0 : index
    %108 = vector.load %arg5[%107, %c0_25, %c0_26] : memref<8x8x128xf32, #tpu.memory_space<vmem>>, vector<1x8x128xf32>
    %109 = vector.shape_cast %108 : vector<1x8x128xf32> to vector<8x128xf32>
    %110 = vector.shape_cast %106 : vector<8x128xf32> to vector<1x8x128xf32>
    tpu.vector_store %arg5[%107, %c0_25, %c0_26], %110 {strides = array<i32>} : memref<8x8x128xf32, #tpu.memory_space<vmem>>, vector<1x8x128xf32>,
    %c3_i32 = arith.constant 3 : i32
    %111 = arith.index_cast %c3_i32 : i32 to index
    %c0_27 = arith.constant 0 : index
    %c0_28 = arith.constant 0 : index
    %112 = vector.load %arg1[%111, %c0_27, %c0_28] : memref<8x8x384xf32, #tpu.memory_space<vmem>>, vector<1x8x384xf32>
    %113 = vector.shape_cast %112 : vector<1x8x384xf32> to vector<8x384xf32>
    %114 = arith.truncf %106 : vector<8x128xf32> to vector<8x128xbf16>
    %cst_29 = arith.constant dense<0.000000e+00> : vector<8x384xf32>
    %115 = tpu.matmul %114, %3, %cst_29 {dimension_numbers = #tpu.dot_dimension_numbers<[1], [0], [0], [1], [0, 0, 1, 1], [], []>} : vector<8x128xbf16>, vector<128x384xbf16>, vector<8x384xf32> -> vector<8x384xf32>
    %116 = vector.broadcast %4 : vector<1x384xf32> to vector<8x384xf32>
    %117 = arith.addf %115, %116 : vector<8x384xf32>
    %118 = vector.extract_strided_slice %113 {offsets = [0, 0], sizes = [8, 128], strides = [1, 1]} : vector<8x384xf32> to vector<8x128xf32>
    %119 = vector.extract_strided_slice %117 {offsets = [0, 0], sizes = [8, 128], strides = [1, 1]} : vector<8x384xf32> to vector<8x128xf32>
    %120 = arith.addf %118, %119 : vector<8x128xf32>
    %121 = arith.negf %120 : vector<8x128xf32>
    %122 = math.exp %121 : vector<8x128xf32>
    %cst_30 = arith.constant 1.000000e+00 : f32
    %123 = vector.broadcast %cst_30 : f32 to vector<8x128xf32>
    %124 = arith.addf %123, %122 : vector<8x128xf32>
    %125 = arith.divf %123, %124 : vector<8x128xf32>
    %126 = vector.extract_strided_slice %113 {offsets = [0, 128], sizes = [8, 128], strides = [1, 1]} : vector<8x384xf32> to vector<8x128xf32>
    %127 = vector.extract_strided_slice %117 {offsets = [0, 128], sizes = [8, 128], strides = [1, 1]} : vector<8x384xf32> to vector<8x128xf32>
    %128 = arith.addf %126, %127 : vector<8x128xf32>
    %129 = arith.negf %128 : vector<8x128xf32>
    %130 = math.exp %129 : vector<8x128xf32>
    %cst_31 = arith.constant 1.000000e+00 : f32
    %131 = vector.broadcast %cst_31 : f32 to vector<8x128xf32>
    %132 = arith.addf %131, %130 : vector<8x128xf32>
    %133 = arith.divf %131, %132 : vector<8x128xf32>
    %134 = vector.extract_strided_slice %113 {offsets = [0, 256], sizes = [8, 128], strides = [1, 1]} : vector<8x384xf32> to vector<8x128xf32>
    %135 = vector.extract_strided_slice %117 {offsets = [0, 256], sizes = [8, 128], strides = [1, 1]} : vector<8x384xf32> to vector<8x128xf32>
    %136 = arith.mulf %125, %135 : vector<8x128xf32>
    %137 = arith.addf %134, %136 : vector<8x128xf32>
    %138 = math.tanh %137 : vector<8x128xf32>
    %139 = arith.subf %106, %138 : vector<8x128xf32>
    %140 = arith.mulf %133, %139 : vector<8x128xf32>
    %141 = arith.addf %138, %140 : vector<8x128xf32>
    %142 = arith.index_cast %c3_i32 : i32 to index
    %c0_32 = arith.constant 0 : index
    %c0_33 = arith.constant 0 : index
    %143 = vector.load %arg5[%142, %c0_32, %c0_33] : memref<8x8x128xf32, #tpu.memory_space<vmem>>, vector<1x8x128xf32>
    %144 = vector.shape_cast %143 : vector<1x8x128xf32> to vector<8x128xf32>
    %145 = vector.shape_cast %141 : vector<8x128xf32> to vector<1x8x128xf32>
    tpu.vector_store %arg5[%142, %c0_32, %c0_33], %145 {strides = array<i32>} : memref<8x8x128xf32, #tpu.memory_space<vmem>>, vector<1x8x128xf32>,
    %c4_i32 = arith.constant 4 : i32
    %146 = arith.index_cast %c4_i32 : i32 to index
    %c0_34 = arith.constant 0 : index
    %c0_35 = arith.constant 0 : index
    %147 = vector.load %arg1[%146, %c0_34, %c0_35] : memref<8x8x384xf32, #tpu.memory_space<vmem>>, vector<1x8x384xf32>
    %148 = vector.shape_cast %147 : vector<1x8x384xf32> to vector<8x384xf32>
    %149 = arith.truncf %141 : vector<8x128xf32> to vector<8x128xbf16>
    %cst_36 = arith.constant dense<0.000000e+00> : vector<8x384xf32>
    %150 = tpu.matmul %149, %3, %cst_36 {dimension_numbers = #tpu.dot_dimension_numbers<[1], [0], [0], [1], [0, 0, 1, 1], [], []>} : vector<8x128xbf16>, vector<128x384xbf16>, vector<8x384xf32> -> vector<8x384xf32>
    %151 = vector.broadcast %4 : vector<1x384xf32> to vector<8x384xf32>
    %152 = arith.addf %150, %151 : vector<8x384xf32>
    %153 = vector.extract_strided_slice %148 {offsets = [0, 0], sizes = [8, 128], strides = [1, 1]} : vector<8x384xf32> to vector<8x128xf32>
    %154 = vector.extract_strided_slice %152 {offsets = [0, 0], sizes = [8, 128], strides = [1, 1]} : vector<8x384xf32> to vector<8x128xf32>
    %155 = arith.addf %153, %154 : vector<8x128xf32>
    %156 = arith.negf %155 : vector<8x128xf32>
    %157 = math.exp %156 : vector<8x128xf32>
    %cst_37 = arith.constant 1.000000e+00 : f32
    %158 = vector.broadcast %cst_37 : f32 to vector<8x128xf32>
    %159 = arith.addf %158, %157 : vector<8x128xf32>
    %160 = arith.divf %158, %159 : vector<8x128xf32>
    %161 = vector.extract_strided_slice %148 {offsets = [0, 128], sizes = [8, 128], strides = [1, 1]} : vector<8x384xf32> to vector<8x128xf32>
    %162 = vector.extract_strided_slice %152 {offsets = [0, 128], sizes = [8, 128], strides = [1, 1]} : vector<8x384xf32> to vector<8x128xf32>
    %163 = arith.addf %161, %162 : vector<8x128xf32>
    %164 = arith.negf %163 : vector<8x128xf32>
    %165 = math.exp %164 : vector<8x128xf32>
    %cst_38 = arith.constant 1.000000e+00 : f32
    %166 = vector.broadcast %cst_38 : f32 to vector<8x128xf32>
    %167 = arith.addf %166, %165 : vector<8x128xf32>
    %168 = arith.divf %166, %167 : vector<8x128xf32>
    %169 = vector.extract_strided_slice %148 {offsets = [0, 256], sizes = [8, 128], strides = [1, 1]} : vector<8x384xf32> to vector<8x128xf32>
    %170 = vector.extract_strided_slice %152 {offsets = [0, 256], sizes = [8, 128], strides = [1, 1]} : vector<8x384xf32> to vector<8x128xf32>
    %171 = arith.mulf %160, %170 : vector<8x128xf32>
    %172 = arith.addf %169, %171 : vector<8x128xf32>
    %173 = math.tanh %172 : vector<8x128xf32>
    %174 = arith.subf %141, %173 : vector<8x128xf32>
    %175 = arith.mulf %168, %174 : vector<8x128xf32>
    %176 = arith.addf %173, %175 : vector<8x128xf32>
    %177 = arith.index_cast %c4_i32 : i32 to index
    %c0_39 = arith.constant 0 : index
    %c0_40 = arith.constant 0 : index
    %178 = vector.load %arg5[%177, %c0_39, %c0_40] : memref<8x8x128xf32, #tpu.memory_space<vmem>>, vector<1x8x128xf32>
    %179 = vector.shape_cast %178 : vector<1x8x128xf32> to vector<8x128xf32>
    %180 = vector.shape_cast %176 : vector<8x128xf32> to vector<1x8x128xf32>
    tpu.vector_store %arg5[%177, %c0_39, %c0_40], %180 {strides = array<i32>} : memref<8x8x128xf32, #tpu.memory_space<vmem>>, vector<1x8x128xf32>,
    %c5_i32 = arith.constant 5 : i32
    %181 = arith.index_cast %c5_i32 : i32 to index
    %c0_41 = arith.constant 0 : index
    %c0_42 = arith.constant 0 : index
    %182 = vector.load %arg1[%181, %c0_41, %c0_42] : memref<8x8x384xf32, #tpu.memory_space<vmem>>, vector<1x8x384xf32>
    %183 = vector.shape_cast %182 : vector<1x8x384xf32> to vector<8x384xf32>
    %184 = arith.truncf %176 : vector<8x128xf32> to vector<8x128xbf16>
    %cst_43 = arith.constant dense<0.000000e+00> : vector<8x384xf32>
    %185 = tpu.matmul %184, %3, %cst_43 {dimension_numbers = #tpu.dot_dimension_numbers<[1], [0], [0], [1], [0, 0, 1, 1], [], []>} : vector<8x128xbf16>, vector<128x384xbf16>, vector<8x384xf32> -> vector<8x384xf32>
    %186 = vector.broadcast %4 : vector<1x384xf32> to vector<8x384xf32>
    %187 = arith.addf %185, %186 : vector<8x384xf32>
    %188 = vector.extract_strided_slice %183 {offsets = [0, 0], sizes = [8, 128], strides = [1, 1]} : vector<8x384xf32> to vector<8x128xf32>
    %189 = vector.extract_strided_slice %187 {offsets = [0, 0], sizes = [8, 128], strides = [1, 1]} : vector<8x384xf32> to vector<8x128xf32>
    %190 = arith.addf %188, %189 : vector<8x128xf32>
    %191 = arith.negf %190 : vector<8x128xf32>
    %192 = math.exp %191 : vector<8x128xf32>
    %cst_44 = arith.constant 1.000000e+00 : f32
    %193 = vector.broadcast %cst_44 : f32 to vector<8x128xf32>
    %194 = arith.addf %193, %192 : vector<8x128xf32>
    %195 = arith.divf %193, %194 : vector<8x128xf32>
    %196 = vector.extract_strided_slice %183 {offsets = [0, 128], sizes = [8, 128], strides = [1, 1]} : vector<8x384xf32> to vector<8x128xf32>
    %197 = vector.extract_strided_slice %187 {offsets = [0, 128], sizes = [8, 128], strides = [1, 1]} : vector<8x384xf32> to vector<8x128xf32>
    %198 = arith.addf %196, %197 : vector<8x128xf32>
    %199 = arith.negf %198 : vector<8x128xf32>
    %200 = math.exp %199 : vector<8x128xf32>
    %cst_45 = arith.constant 1.000000e+00 : f32
    %201 = vector.broadcast %cst_45 : f32 to vector<8x128xf32>
    %202 = arith.addf %201, %200 : vector<8x128xf32>
    %203 = arith.divf %201, %202 : vector<8x128xf32>
    %204 = vector.extract_strided_slice %183 {offsets = [0, 256], sizes = [8, 128], strides = [1, 1]} : vector<8x384xf32> to vector<8x128xf32>
    %205 = vector.extract_strided_slice %187 {offsets = [0, 256], sizes = [8, 128], strides = [1, 1]} : vector<8x384xf32> to vector<8x128xf32>
    %206 = arith.mulf %195, %205 : vector<8x128xf32>
    %207 = arith.addf %204, %206 : vector<8x128xf32>
    %208 = math.tanh %207 : vector<8x128xf32>
    %209 = arith.subf %176, %208 : vector<8x128xf32>
    %210 = arith.mulf %203, %209 : vector<8x128xf32>
    %211 = arith.addf %208, %210 : vector<8x128xf32>
    %212 = arith.index_cast %c5_i32 : i32 to index
    %c0_46 = arith.constant 0 : index
    %c0_47 = arith.constant 0 : index
    %213 = vector.load %arg5[%212, %c0_46, %c0_47] : memref<8x8x128xf32, #tpu.memory_space<vmem>>, vector<1x8x128xf32>
    %214 = vector.shape_cast %213 : vector<1x8x128xf32> to vector<8x128xf32>
    %215 = vector.shape_cast %211 : vector<8x128xf32> to vector<1x8x128xf32>
    tpu.vector_store %arg5[%212, %c0_46, %c0_47], %215 {strides = array<i32>} : memref<8x8x128xf32, #tpu.memory_space<vmem>>, vector<1x8x128xf32>,
    %c6_i32 = arith.constant 6 : i32
    %216 = arith.index_cast %c6_i32 : i32 to index
    %c0_48 = arith.constant 0 : index
    %c0_49 = arith.constant 0 : index
    %217 = vector.load %arg1[%216, %c0_48, %c0_49] : memref<8x8x384xf32, #tpu.memory_space<vmem>>, vector<1x8x384xf32>
    %218 = vector.shape_cast %217 : vector<1x8x384xf32> to vector<8x384xf32>
    %219 = arith.truncf %211 : vector<8x128xf32> to vector<8x128xbf16>
    %cst_50 = arith.constant dense<0.000000e+00> : vector<8x384xf32>
    %220 = tpu.matmul %219, %3, %cst_50 {dimension_numbers = #tpu.dot_dimension_numbers<[1], [0], [0], [1], [0, 0, 1, 1], [], []>} : vector<8x128xbf16>, vector<128x384xbf16>, vector<8x384xf32> -> vector<8x384xf32>
    %221 = vector.broadcast %4 : vector<1x384xf32> to vector<8x384xf32>
    %222 = arith.addf %220, %221 : vector<8x384xf32>
    %223 = vector.extract_strided_slice %218 {offsets = [0, 0], sizes = [8, 128], strides = [1, 1]} : vector<8x384xf32> to vector<8x128xf32>
    %224 = vector.extract_strided_slice %222 {offsets = [0, 0], sizes = [8, 128], strides = [1, 1]} : vector<8x384xf32> to vector<8x128xf32>
    %225 = arith.addf %223, %224 : vector<8x128xf32>
    %226 = arith.negf %225 : vector<8x128xf32>
    %227 = math.exp %226 : vector<8x128xf32>
    %cst_51 = arith.constant 1.000000e+00 : f32
    %228 = vector.broadcast %cst_51 : f32 to vector<8x128xf32>
    %229 = arith.addf %228, %227 : vector<8x128xf32>
    %230 = arith.divf %228, %229 : vector<8x128xf32>
    %231 = vector.extract_strided_slice %218 {offsets = [0, 128], sizes = [8, 128], strides = [1, 1]} : vector<8x384xf32> to vector<8x128xf32>
    %232 = vector.extract_strided_slice %222 {offsets = [0, 128], sizes = [8, 128], strides = [1, 1]} : vector<8x384xf32> to vector<8x128xf32>
    %233 = arith.addf %231, %232 : vector<8x128xf32>
    %234 = arith.negf %233 : vector<8x128xf32>
    %235 = math.exp %234 : vector<8x128xf32>
    %cst_52 = arith.constant 1.000000e+00 : f32
    %236 = vector.broadcast %cst_52 : f32 to vector<8x128xf32>
    %237 = arith.addf %236, %235 : vector<8x128xf32>
    %238 = arith.divf %236, %237 : vector<8x128xf32>
    %239 = vector.extract_strided_slice %218 {offsets = [0, 256], sizes = [8, 128], strides = [1, 1]} : vector<8x384xf32> to vector<8x128xf32>
    %240 = vector.extract_strided_slice %222 {offsets = [0, 256], sizes = [8, 128], strides = [1, 1]} : vector<8x384xf32> to vector<8x128xf32>
    %241 = arith.mulf %230, %240 : vector<8x128xf32>
    %242 = arith.addf %239, %241 : vector<8x128xf32>
    %243 = math.tanh %242 : vector<8x128xf32>
    %244 = arith.subf %211, %243 : vector<8x128xf32>
    %245 = arith.mulf %238, %244 : vector<8x128xf32>
    %246 = arith.addf %243, %245 : vector<8x128xf32>
    %247 = arith.index_cast %c6_i32 : i32 to index
    %c0_53 = arith.constant 0 : index
    %c0_54 = arith.constant 0 : index
    %248 = vector.load %arg5[%247, %c0_53, %c0_54] : memref<8x8x128xf32, #tpu.memory_space<vmem>>, vector<1x8x128xf32>
    %249 = vector.shape_cast %248 : vector<1x8x128xf32> to vector<8x128xf32>
    %250 = vector.shape_cast %246 : vector<8x128xf32> to vector<1x8x128xf32>
    tpu.vector_store %arg5[%247, %c0_53, %c0_54], %250 {strides = array<i32>} : memref<8x8x128xf32, #tpu.memory_space<vmem>>, vector<1x8x128xf32>,
    %c7_i32 = arith.constant 7 : i32
    %251 = arith.index_cast %c7_i32 : i32 to index
    %c0_55 = arith.constant 0 : index
    %c0_56 = arith.constant 0 : index
    %252 = vector.load %arg1[%251, %c0_55, %c0_56] : memref<8x8x384xf32, #tpu.memory_space<vmem>>, vector<1x8x384xf32>
    %253 = vector.shape_cast %252 : vector<1x8x384xf32> to vector<8x384xf32>
    %254 = arith.truncf %246 : vector<8x128xf32> to vector<8x128xbf16>
    %cst_57 = arith.constant dense<0.000000e+00> : vector<8x384xf32>
    %255 = tpu.matmul %254, %3, %cst_57 {dimension_numbers = #tpu.dot_dimension_numbers<[1], [0], [0], [1], [0, 0, 1, 1], [], []>} : vector<8x128xbf16>, vector<128x384xbf16>, vector<8x384xf32> -> vector<8x384xf32>
    %256 = vector.broadcast %4 : vector<1x384xf32> to vector<8x384xf32>
    %257 = arith.addf %255, %256 : vector<8x384xf32>
    %258 = vector.extract_strided_slice %253 {offsets = [0, 0], sizes = [8, 128], strides = [1, 1]} : vector<8x384xf32> to vector<8x128xf32>
    %259 = vector.extract_strided_slice %257 {offsets = [0, 0], sizes = [8, 128], strides = [1, 1]} : vector<8x384xf32> to vector<8x128xf32>
    %260 = arith.addf %258, %259 : vector<8x128xf32>
    %261 = arith.negf %260 : vector<8x128xf32>
    %262 = math.exp %261 : vector<8x128xf32>
    %cst_58 = arith.constant 1.000000e+00 : f32
    %263 = vector.broadcast %cst_58 : f32 to vector<8x128xf32>
    %264 = arith.addf %263, %262 : vector<8x128xf32>
    %265 = arith.divf %263, %264 : vector<8x128xf32>
    %266 = vector.extract_strided_slice %253 {offsets = [0, 128], sizes = [8, 128], strides = [1, 1]} : vector<8x384xf32> to vector<8x128xf32>
    %267 = vector.extract_strided_slice %257 {offsets = [0, 128], sizes = [8, 128], strides = [1, 1]} : vector<8x384xf32> to vector<8x128xf32>
    %268 = arith.addf %266, %267 : vector<8x128xf32>
    %269 = arith.negf %268 : vector<8x128xf32>
    %270 = math.exp %269 : vector<8x128xf32>
    %cst_59 = arith.constant 1.000000e+00 : f32
    %271 = vector.broadcast %cst_59 : f32 to vector<8x128xf32>
    %272 = arith.addf %271, %270 : vector<8x128xf32>
    %273 = arith.divf %271, %272 : vector<8x128xf32>
    %274 = vector.extract_strided_slice %253 {offsets = [0, 256], sizes = [8, 128], strides = [1, 1]} : vector<8x384xf32> to vector<8x128xf32>
    %275 = vector.extract_strided_slice %257 {offsets = [0, 256], sizes = [8, 128], strides = [1, 1]} : vector<8x384xf32> to vector<8x128xf32>
    %276 = arith.mulf %265, %275 : vector<8x128xf32>
    %277 = arith.addf %274, %276 : vector<8x128xf32>
    %278 = math.tanh %277 : vector<8x128xf32>
    %279 = arith.subf %246, %278 : vector<8x128xf32>
    %280 = arith.mulf %273, %279 : vector<8x128xf32>
    %281 = arith.addf %278, %280 : vector<8x128xf32>
    %282 = arith.index_cast %c7_i32 : i32 to index
    %c0_60 = arith.constant 0 : index
    %c0_61 = arith.constant 0 : index
    %283 = vector.load %arg5[%282, %c0_60, %c0_61] : memref<8x8x128xf32, #tpu.memory_space<vmem>>, vector<1x8x128xf32>
    %284 = vector.shape_cast %283 : vector<1x8x128xf32> to vector<8x128xf32>
    %285 = vector.shape_cast %281 : vector<8x128xf32> to vector<1x8x128xf32>
    tpu.vector_store %arg5[%282, %c0_60, %c0_61], %285 {strides = array<i32>} : memref<8x8x128xf32, #tpu.memory_space<vmem>>, vector<1x8x128xf32>,
    %c8_i32 = arith.constant 8 : i32
    %c0_62 = arith.constant 0 : index
    %c0_63 = arith.constant 0 : index
    %286 = vector.load %arg6[%c0_62, %c0_63] : memref<8x128xf32, #tpu.memory_space<vmem>>, vector<8x128xf32>
    tpu.vector_store %arg6[%c0_62, %c0_63], %281 {strides = array<i32>} : memref<8x128xf32, #tpu.memory_space<vmem>>, vector<8x128xf32>,
    return
  }
  func.func @transform_0(%arg0: i32) -> (i32, i32, i32) {
    %c0_i32 = arith.constant 0 : i32
    %c0_i32_0 = arith.constant 0 : i32
    %c0_i32_1 = arith.constant 0 : i32
    return %arg0, %c0_i32, %c0_i32_0 : i32, i32, i32
  }
  func.func @transform_1(%arg0: i32) -> (i32, i32) {
    %c0_i32 = arith.constant 0 : i32
    %c0_i32_0 = arith.constant 0 : i32
    %c0_i32_1 = arith.constant 0 : i32
    return %c0_i32, %c0_i32_0 : i32, i32
  }
  func.func @transform_2(%arg0: i32) -> (i32, i32) {
    %c0_i32 = arith.constant 0 : i32
    %c0_i32_0 = arith.constant 0 : i32
    %c0_i32_1 = arith.constant 0 : i32
    return %c0_i32, %c0_i32_0 : i32, i32
  }
  func.func @transform_3(%arg0: i32) -> (i32, i32) {
    %c0_i32 = arith.constant 0 : i32
    %c0_i32_0 = arith.constant 0 : i32
    %c0_i32_1 = arith.constant 0 : i32
    return %c0_i32, %c0_i32_0 : i32, i32
  }
  func.func @transform_4(%arg0: i32) -> (i32, i32, i32) {
    %c0_i32 = arith.constant 0 : i32
    %c0_i32_0 = arith.constant 0 : i32
    %c0_i32_1 = arith.constant 0 : i32
    return %arg0, %c0_i32, %c0_i32_0 : i32, i32, i32
  }
}

</mosaic_0001>

<bundles_post_ra>
// kernel: rnn_rollout.3
= control target key start
LH: loop header
LB: loop body
LE: loop exit
PB: predicated region body
PF: predicated region fallthrough
CT: control target
= control target key end

     0   :  { %10 = vsyncpa [#allocation3], 0  ;;  %s1042_s0 = inlined_call_operand.vmem [shape: bf16[64,128], index: 0, kind: input, shape index: {}]   ;;  %s1043_s1 = inlined_call_operand.hbm [shape: bf16[128,128], index: 1, kind: input, shape index: {}]   ;;  %s1044_s2 = inlined_call_operand.vmem [shape: f32[1,128], index: 2, kind: input, shape index: {}]   ;;  %s1045_s3 = inlined_call_operand.vmem [shape: bf16[128,384], index: 3, kind: input, shape index: {}]   ;;  %s1046_s4 = inlined_call_operand.hbm [shape: f32[1,384], index: 4, kind: input, shape index: {}]   ;;  %s1047_s5 = inlined_call_operand.vmem [shape: f32[64,384], index: 5, kind: output, shape index: {}]  }
   0x1   :  { %11 = vsyncpa [#allocation5], 0  ;;  %s790_s18 = smov [#allocation2]  }
   0x2   :  { %s19_s19 = sshll.u32 %s790_s18, 4  ;;  %s20_s19 = int_to_ptr.vmem [resolvable:$true] %s19_s19 }
   0x3   :  { %s754_s20 = scalar_lea.vmem %s20_s19, 1024  ;;  %p759_p1 = scmp.lt.s32.totalorder %s20_s19, %s20_s19 }
   0x4   :  { %p755_p0 = scmp.ne.s32.totalorder %s20_s19, %s754_s20  ;;  %p760_p2 = scmp.lt.s32.totalorder %s754_s20, %s754_s20 }
   0x6   :  { %p761_p3 = por %p760_p2, %p759_p1 }
   0x8   :  { %p762_p4 = pnand %p761_p3, %p755_p0 }
   0xa   :  { %765 = shalt.err (!%p762_p4)
}
   0xb   :  { %s791_s21 = smov 64   ;;  %s792_s22 = smov 4  }
   0xc   :  { %25 = dma.hbm_to_vmem [thread:$0]  %s1043_s1, 1024, %s20_s19, [#allocation3], %s791_s21, %s791_s21, %s792_s22  }
   0xd   :  { %s793_s25 = smov [#allocation4]  }
   0xe   :  { %s36_s26 = sshll.u32 %s793_s25, 4  ;;  %s37_s26 = int_to_ptr.vmem [resolvable:$true] %s36_s26 }
   0xf   :  { %s774_s27 = scalar_lea.vmem %s37_s26, 48  ;;  %s778_s28 = scalar_lea.vmem %s37_s26, 64 }
  0x10   :  { %p775_p5 = scmp.ne.s32.totalorder %s37_s26, %s774_s27  ;;  %p779_p6 = scmp.lt.s32.totalorder %s37_s26, %s37_s26 }
  0x11   :  { %p780_p7 = scmp.lt.s32.totalorder %s778_s28, %s774_s27 }
  0x13   :  { %p781_p8 = por %p780_p7, %p779_p6 }
  0x15   :  { %p782_p9 = pnand %p781_p8, %p775_p5 }
  0x17   :  { %785 = shalt.err (!%p782_p9)
}
  0x18   :  { %39 = dma.hbm_to_vmem [thread:$0]  %s1046_s4, 48, %s37_s26, [#allocation5]  }
  0x19   :  { %786 = dma.done.wait [#allocation3], 1024  }
  0x1a   :  { %787 = vsyncadd [#allocation3], 4294966272 }
  0x1b   :  { %788 = dma.done.wait [#allocation5], 48  }
  0x1c   :  { %789 = vsyncadd [#allocation5], 4294967248  ;;  %v702_v0 = vld [vmem:[#allocation2 + $0x38] sm:$0xff]   ;;  %v703_v1 = vld [vmem:[#allocation2 + $0x30] sm:$0xff]   ;;  %v794_v36 = vmov 0  }
  0x1d   :  { %633 = vmatprep.subr.bf16.mxu0 %v702_v0  ;;  %v704_v2 = vld [vmem:[#allocation2 + $0x28] sm:$0xff]   ;;  %v705_v3 = vld [vmem:[#allocation2 + $0x20] sm:$0xff]   ;;  %v706_v5 = vld [vmem:[#allocation2 + $0x18] sm:$0xff]   ;;  %436 = vmatprep.mubr.bf16.mxu1 %v794_v36 }
  0x1e   :  { %634 = vmatpush3.bf16.msra.mxu0 %v702_v0  ;;  %v710_v4 = vld [vmem:[%s1042_s0] sm:$0xff]   ;;  %v714_v6 = vld [vmem:[%s1045_s3 + $0xac] ss:$12 sps:$4 sm:$0xff]   ;;  %v716_v7 = vld [vmem:[%s1045_s3 + $0xa8] ss:$12 sps:$4 sm:$0xff]  }
  0x1f   :  { %635 = vmatprep.subr.bf16.mxu0 %v703_v1  ;;  %649 = vmatprep.mubr.bf16.mxu0 %v710_v4  ;;  %v718_v8 = vld [vmem:[%s1045_s3 + $0x94] ss:$12 sps:$4 sm:$0xff]   ;;  %v720_v9 = vld [vmem:[%s1045_s3 + $0x90] ss:$12 sps:$4 sm:$0xff]   ;;  %v708_v12 = vld [vmem:[#allocation2 + $0x8] sm:$0xff]  }
  0x20   :  { %404 = vmatprep.subr.bf16.mxu1 %v714_v6  ;;  %v707_v10 = vld [vmem:[#allocation2 + $0x10] sm:$0xff]   ;;  %v722_v11 = vld [vmem:[%s1045_s3 + $0x7c] ss:$12 sps:$4 sm:$0xff]   ;;  %v724_v13 = vld [vmem:[%s1045_s3 + $0x78] ss:$12 sps:$4 sm:$0xff]  }
  0x21   :  { %405 = vmatpush1.bf16.msra.mxu1 %v716_v7  ;;  %v726_v14 = vld [vmem:[%s1045_s3 + $0x64] ss:$12 sps:$4 sm:$0xff]   ;;  %v728_v16 = vld [vmem:[%s1045_s3 + $0x60] ss:$12 sps:$4 sm:$0xff]   ;;  %v732_v18 = vld [vmem:[%s1045_s3 + $0x48] ss:$12 sps:$4 sm:$0xff]  }
  0x22   :  { %636 = vmatpush3.bf16.msra.mxu0 %v703_v1  ;;  %406 = vmatprep.subr.bf16.mxu1 %v718_v8  ;;  %v709_v15 = vld [vmem:[#allocation2] sm:$0xff]   ;;  %v730_v17 = vld [vmem:[%s1045_s3 + $0x4c] ss:$12 sps:$4 sm:$0xff]   ;;  %v867_v19 = vld [vmem:[%s1045_s3 + $0xb0] ss:$12 sps:$4 sm:$0xff]  }
  0x23   :  { %637 = vmatprep.subr.bf16.mxu0 %v704_v2  ;;  %v711_v20 = vld [vmem:[%s1042_s0 + $0x8] sm:$0xff]   ;;  %v712_v21 = vld [vmem:[%s1042_s0 + $0x10] sm:$0xff]   ;;  %v879_v22 = vld [vmem:[%s1045_s3 + $0x98] ss:$12 sps:$4 sm:$0xff]  }
  0x24   :  { %v886_v23 = vld [vmem:[%s1045_s3 + $0x80] ss:$12 sps:$4 sm:$0xff]   ;;  %v713_v24 = vld [vmem:[%s1042_s0 + $0x18] sm:$0xff]   ;;  %v896_v25 = vld [vmem:[%s1045_s3 + $0x68] ss:$12 sps:$4 sm:$0xff]  }
  0x25   :  { %407 = vmatpush1.bf16.msra.mxu1 %v720_v9  ;;  %v903_v26 = vld [vmem:[%s1045_s3 + $0x50] ss:$12 sps:$4 sm:$0xff]   ;;  %v734_v27 = vld [vmem:[%s1045_s3 + $0x34] ss:$12 sps:$4 sm:$0xff]   ;;  %v917_v29 = vld [vmem:[%s1045_s3 + $0x38] ss:$12 sps:$4 sm:$0xff]  }
  0x26   :  { %638 = vmatpush3.bf16.msra.mxu0 %v704_v2  ;;  %408 = vmatprep.subr.bf16.mxu1 %v722_v11  ;;  %v736_v28 = vld [vmem:[%s1045_s3 + $0x30] ss:$12 sps:$4 sm:$0xff]   ;;  %v740_v31 = vld [vmem:[%s1045_s3 + $0x18] ss:$12 sps:$4 sm:$0xff]   ;;  %v930_v32 = vld [vmem:[%s1045_s3 + $0x20] ss:$12 sps:$4 sm:$0xff]   ;;  %v261_v2 = vlaneseq }
  0x27   :  { %639 = vmatprep.subr.bf16.mxu0 %v705_v3  ;;  %v738_v30 = vld [vmem:[%s1045_s3 + $0x1c] ss:$12 sps:$4 sm:$0xff]   ;;  %v742_v33 = vld [vmem:[%s1045_s3 + $0x4] ss:$12 sps:$4 sm:$0xff]   ;;  %v744_v34 = vld [vmem:[%s1045_s3] ss:$12 sps:$4 sm:$0xff]  }
  0x28   :  { %v745_v35 = vld [vmem:[%s1045_s3 + $0x8] ss:$12 sps:$4 sm:$0xff]   ;;  %v572_v39 = vld [vmem:[%s1044_s2] ss:$0 sm:$0xff] }
  0x29   :  { %409 = vmatpush1.bf16.msra.mxu1 %v724_v13 }
  0x2a   :  { %640 = vmatpush3.bf16.msra.mxu0 %v705_v3  ;;  %410 = vmatprep.subr.bf16.mxu1 %v726_v14  ;;  %v262_v3 = vshrl.u32 %v261_v2, 7 }
  0x2b   :  { %641 = vmatprep.subr.bf16.mxu0 %v706_v5 }
  0x2c   :  { %v263_v4 = vsub.s32 0, %v262_v3  ;;  %v271_v6 = vsub.s32 2, %v262_v3  ;;  %v267_v7 = vsub.s32 1, %v262_v3 }
  0x2d   :  { %411 = vmatpush1.bf16.msra.mxu1 %v728_v16 }
  0x2e   :  { %642 = vmatpush3.bf16.msra.mxu0 %v706_v5  ;;  %412 = vmatprep.subr.bf16.mxu1 %v730_v17  ;;  %v259_v5 = vld [vmem:[#allocation4] sm:$0x7] }
  0x2f   :  { %643 = vmatprep.subr.bf16.mxu0 %v707_v10  ;;  %v264_v8 = vrot.slane %v259_v5, %v263_v4  ;;  %v960_v9 = vrot.slane %v259_v5, %v271_v6 }
  0x31   :  { %413 = vmatpush1.bf16.msra.mxu1 %v732_v18 }
  0x32   :  { %644 = vmatpush3.bf16.msra.mxu0 %v707_v10  ;;  %414 = vmatprep.subr.bf16.mxu1 %v734_v27  ;;  %v268_v10 = vrot.slane %v259_v5, %v267_v7 }
  0x33   :  { %645 = vmatprep.subr.bf16.mxu0 %v708_v12 }
  0x35   :  { %415 = vmatpush1.bf16.msra.mxu1 %v736_v28 }
  0x36   :  { %646 = vmatpush3.bf16.msra.mxu0 %v708_v12  ;;  %416 = vmatprep.subr.bf16.mxu1 %v738_v30 }
  0x37   :  { %647 = vmatprep.subr.bf16.mxu0 %v709_v15 }
  0x39   :  { %417 = vmatpush1.bf16.msra.mxu1 %v740_v31 }
  0x3a   :  { %648 = vmatpush3.bf16.msra.mxu0 %v709_v15  ;;  %418 = vmatprep.subr.bf16.mxu1 %v742_v33 }
  0x3b   :  { %657 = vmatprep.subr.bf16.mxu0 %v867_v19 }
  0x3d   :  { %650 = vmatmul.mubr.bf16.vlgmr.msra.gmra.mxu0 %v711_v20  ;;  %419 = vmatpush1.bf16.msra.mxu1 %v744_v34 }
  0x3e   :  { %653 = vmatprep.mubr.bf16.mxu0 %v712_v21  ;;  %658 = vmatpush3.bf16.msra.mxu0 %v867_v19 }
  0x3f   :  { %659 = vmatprep.subr.bf16.mxu0 %v879_v22  ;;  %681 = vmatprep.subr.bf16.mxu1 %v867_v19 }
  0x42   :  { %660 = vmatpush3.bf16.msra.mxu0 %v879_v22 }
  0x43   :  { %661 = vmatprep.subr.bf16.mxu0 %v886_v23 }
  0x45   :  { %654 = vmatmul.mubr.bf16.gmra.mxu0 %v713_v24 }
  0x46   :  { %662 = vmatpush3.bf16.msra.mxu0 %v886_v23 }
  0x47   :  { %663 = vmatprep.subr.bf16.mxu0 %v896_v25 }
  0x4a   :  { %664 = vmatpush3.bf16.msra.mxu0 %v896_v25 }
  0x4b   :  { %665 = vmatprep.subr.bf16.mxu0 %v903_v26 }
  0x4e   :  { %666 = vmatpush3.bf16.msra.mxu0 %v903_v26 }
  0x4f   :  { %667 = vmatprep.subr.bf16.mxu0 %v917_v29 }
  0x52   :  { %668 = vmatpush3.bf16.msra.mxu0 %v917_v29 }
  0x53   :  { %669 = vmatprep.subr.bf16.mxu0 %v930_v32 }
  0x56   :  { %670 = vmatpush3.bf16.msra.mxu0 %v930_v32 }
  0x57   :  { %671 = vmatprep.subr.bf16.mxu0 %v745_v35 }
  0x5a   :  { %672 = vmatpush3.bf16.msra.mxu0 %v745_v35 }
  0xfd   :  { %v651_v37 = vpop.f32.mrf.mxu0 }
  0xfe   :  { %v193_v43 = vadd.f32 %v651_v37, %v572_v39 }
  0xff   :  { %v184_v38 = vpop.f32.mrf.mxu0 }
 0x100   :  { %v185_v41 = vadd.f32 %v572_v39, %v184_v38  ;;  %v217_v50 = vmax.f32 %v193_v43, 0.0 }
 0x101   :  { %v652_v40 = vpop.f32.mrf.mxu0 }
 0x102   :  { %v196_v42 = vadd.f32 %v652_v40, %v572_v39  ;;  %v215_v48 = vmax.f32 %v185_v41, 0.0 }
 0x103   :  { %v187_v44 = vpop.f32.mrf.mxu0 }
 0x104   :  { %v188_v45 = vadd.f32 %v572_v39, %v187_v44  ;;  %v218_v46 = vmax.f32 %v196_v42, 0.0 }
 0x105   :  { %v655_v47 = vpop.f32.mrf.mxu0 }
 0x106   :  { %v216_v49 = vmax.f32 %v188_v45, 0.0  ;;  %v224_v53 = vpack.c.bf16 %v218_v46, %v217_v50  ;;  %v209_v60 = vadd.f32 %v655_v47, %v572_v39 }
 0x107   :  { %v200_v51 = vpop.f32.mrf.mxu0 }
 0x108   :  { %v223_v52 = vpack.c.bf16 %v216_v49, %v215_v48  ;;  %v201_v56 = vadd.f32 %v572_v39, %v200_v51  ;;  %v221_v63 = vmax.f32 %v209_v60, 0.0 }
 0x109   :  { %v656_v54 = vpop.f32.mrf.mxu0 }
 0x10a   :  { %437 = vmatmul.mubr.bf16.vlgmr.msra.gmra.mxu1 %v223_v52  ;;  %673 = vmatprep.mubr.bf16.mxu0 %v223_v52  ;;  %v219_v58 = vmax.f32 %v201_v56, 0.0  ;;  %v212_v61 = vadd.f32 %v656_v54, %v572_v39 }
 0x10b   :  { %689 = vmatpush3.bf16.msra.mxu1 %v867_v19  ;;  %674 = vmatmul.mubr.bf16.vlgmr.msra.gmra.mxu0 %v224_v53  ;;  %v203_v55 = vpop.f32.mrf.mxu0 }
 0x10c   :  { %682 = vmatprep.subr.bf16.mxu1 %v879_v22  ;;  %446 = vmatprep.mubr.bf16.mxu1 %v794_v36  ;;  %v204_v57 = vadd.f32 %v572_v39, %v203_v55  ;;  %v222_v0 = vmax.f32 %v212_v61, 0.0 }
 0x10e   :  { %v220_v59 = vmax.f32 %v204_v57, 0.0  ;;  %v226_v1 = vpack.c.bf16 %v222_v0, %v221_v63 }
 0x10f   :  { %690 = vmatpush3.bf16.msra.mxu1 %v879_v22 }
 0x110   :  { %683 = vmatprep.subr.bf16.mxu1 %v886_v23  ;;  %v225_v62 = vpack.c.bf16 %v220_v59, %v219_v58 }
 0x112   :  { %447 = vmatmul.mubr.bf16.gmra.mxu1 %v224_v53 }
 0x113   :  { %691 = vmatpush3.bf16.msra.mxu1 %v886_v23  ;;  %456 = vmatprep.mubr.bf16.mxu1 %v794_v36 }
 0x114   :  { %684 = vmatprep.subr.bf16.mxu1 %v896_v25 }
 0x117   :  { %692 = vmatpush3.bf16.msra.mxu1 %v896_v25 }
 0x118   :  { %685 = vmatprep.subr.bf16.mxu1 %v903_v26 }
 0x11a   :  { %457 = vmatmul.mubr.bf16.gmra.mxu1 %v225_v62 }
 0x11b   :  { %693 = vmatpush3.bf16.msra.mxu1 %v903_v26  ;;  %466 = vmatprep.mubr.bf16.mxu1 %v794_v36 }
 0x11c   :  { %686 = vmatprep.subr.bf16.mxu1 %v917_v29 }
 0x11f   :  { %694 = vmatpush3.bf16.msra.mxu1 %v917_v29 }
 0x120   :  { %687 = vmatprep.subr.bf16.mxu1 %v930_v32 }
 0x122   :  { %467 = vmatmul.mubr.bf16.gmra.mxu1 %v226_v1 }
 0x123   :  { %695 = vmatpush3.bf16.msra.mxu1 %v930_v32  ;;  %677 = vmatprep.mubr.bf16.mxu1 %v225_v62 }
 0x124   :  { %688 = vmatprep.subr.bf16.mxu1 %v745_v35 }
 0x127   :  { %696 = vmatpush3.bf16.msra.mxu1 %v745_v35 }
 0x12a   :  { %678 = vmatmul.mubr.bf16.vlgmr.msra.gmra.mxu1 %v226_v1 }
 0x1ca   :  { %v438_v11 = vpop.f32.mrf.mxu1 }
 0x1cb   :  { %v439_v12 = vadd.f32 %v438_v11, %v264_v8  ;;  %v675_v13 = vpop.f32.mrf.mxu0 }
 0x1cc   :  { %v520_v14 = vadd.f32 %v675_v13, %v960_v9  ;;  %v440_v15 = vpop.f32.mrf.mxu1 }
 0x1cd   :  { %542 = vst [vmem:[%s1047_s5] sm:$0xff] %v439_v12  ;;  %v441_v16 = vadd.f32 %v440_v15, %v268_v10  ;;  %v511_v17 = vpop.f32.mrf.mxu0 }
 0x1ce   :  { %550 = vst [vmem:[%s1047_s5 + $0x40] sm:$0xff] %v520_v14  ;;  %v512_v18 = vadd.f32 %v511_v17, %v960_v9  ;;  %v442_v19 = vpop.f32.mrf.mxu1 }
 0x1cf   :  { %543 = vst [vmem:[%s1047_s5 + $0x8] sm:$0xff] %v441_v16  ;;  %v443_v20 = vadd.f32 %v442_v19, %v264_v8  ;;  %v676_v21 = vpop.f32.mrf.mxu0 }
 0x1d0   :  { %544 = vst [vmem:[%s1047_s5 + $0x10] sm:$0xff] %v512_v18  ;;  %v523_v22 = vadd.f32 %v676_v21, %v960_v9  ;;  %v444_v23 = vpop.f32.mrf.mxu1 }
 0x1d1   :  { %545 = vst [vmem:[%s1047_s5 + $0x18] sm:$0xff] %v443_v20  ;;  %v445_v24 = vadd.f32 %v444_v23, %v268_v10  ;;  %v514_v25 = vpop.f32.mrf.mxu0 }
 0x1d2   :  { %553 = vst [vmem:[%s1047_s5 + $0x58] sm:$0xff] %v523_v22  ;;  %v515_v26 = vadd.f32 %v514_v25, %v960_v9  ;;  %v448_v27 = vpop.f32.mrf.mxu1 }
 0x1d3   :  { %546 = vst [vmem:[%s1047_s5 + $0x20] sm:$0xff] %v445_v24  ;;  %v449_v28 = vadd.f32 %v448_v27, %v264_v8 }
 0x1d4   :  { %547 = vst [vmem:[%s1047_s5 + $0x28] sm:$0xff] %v515_v26  ;;  %v450_v29 = vpop.f32.mrf.mxu1 }
 0x1d5   :  { %548 = vst [vmem:[%s1047_s5 + $0x30] sm:$0xff] %v449_v28  ;;  %v451_v30 = vadd.f32 %v450_v29, %v268_v10 }
 0x1d6   :  { %v452_v31 = vpop.f32.mrf.mxu1 }
 0x1d7   :  { %549 = vst [vmem:[%s1047_s5 + $0x38] sm:$0xff] %v451_v30  ;;  %v453_v32 = vadd.f32 %v452_v31, %v264_v8 }
 0x1d8   :  { %v454_v33 = vpop.f32.mrf.mxu1 }
 0x1d9   :  { %551 = vst [vmem:[%s1047_s5 + $0x48] sm:$0xff] %v453_v32  ;;  %v455_v34 = vadd.f32 %v454_v33, %v268_v10 }
 0x1da   :  { %v458_v35 = vpop.f32.mrf.mxu1 }
 0x1db   :  { %552 = vst [vmem:[%s1047_s5 + $0x50] sm:$0xff] %v455_v34  ;;  %v459_v36 = vadd.f32 %v458_v35, %v264_v8 }
 0x1dc   :  { %v460_v37 = vpop.f32.mrf.mxu1 }
 0x1dd   :  { %554 = vst [vmem:[%s1047_s5 + $0x60] sm:$0xff] %v459_v36  ;;  %v461_v38 = vadd.f32 %v460_v37, %v268_v10 }
 0x1de   :  { %v462_v39 = vpop.f32.mrf.mxu1 }
 0x1df   :  { %555 = vst [vmem:[%s1047_s5 + $0x68] sm:$0xff] %v461_v38  ;;  %v463_v40 = vadd.f32 %v462_v39, %v264_v8 }
 0x1e0   :  { %v464_v41 = vpop.f32.mrf.mxu1 }
 0x1e1   :  { %557 = vst [vmem:[%s1047_s5 + $0x78] sm:$0xff] %v463_v40  ;;  %v465_v42 = vadd.f32 %v464_v41, %v268_v10 }
 0x1e2   :  { %v468_v43 = vpop.f32.mrf.mxu1 }
 0x1e3   :  { %558 = vst [vmem:[%s1047_s5 + $0x80] sm:$0xff] %v465_v42  ;;  %v469_v44 = vadd.f32 %v468_v43, %v264_v8 }
 0x1e4   :  { %v470_v45 = vpop.f32.mrf.mxu1 }
 0x1e5   :  { %560 = vst [vmem:[%s1047_s5 + $0x90] sm:$0xff] %v469_v44  ;;  %v471_v46 = vadd.f32 %v470_v45, %v268_v10 }
 0x1e6   :  { %v472_v47 = vpop.f32.mrf.mxu1 }
 0x1e7   :  { %561 = vst [vmem:[%s1047_s5 + $0x98] sm:$0xff] %v471_v46  ;;  %v473_v48 = vadd.f32 %v472_v47, %v264_v8 }
 0x1e8   :  { %v474_v49 = vpop.f32.mrf.mxu1 }
 0x1e9   :  { %563 = vst [vmem:[%s1047_s5 + $0xa8] sm:$0xff] %v473_v48  ;;  %v475_v50 = vadd.f32 %v474_v49, %v268_v10 }
 0x1ea   :  { %v679_v51 = vpop.f32.mrf.mxu1 }
 0x1eb   :  { %564 = vst [vmem:[%s1047_s5 + $0xb0] sm:$0xff] %v475_v50  ;;  %v536_v52 = vadd.f32 %v679_v51, %v960_v9 }
 0x1ec   :  { %v527_v53 = vpop.f32.mrf.mxu1 }
 0x1ed   :  { %562 = vst [vmem:[%s1047_s5 + $0xa0] sm:$0xff] %v536_v52  ;;  %v528_v54 = vadd.f32 %v527_v53, %v960_v9 }
 0x1ee   :  { %v680_v55 = vpop.f32.mrf.mxu1 }
 0x1ef   :  { %556 = vst [vmem:[%s1047_s5 + $0x70] sm:$0xff] %v528_v54  ;;  %v539_v56 = vadd.f32 %v680_v55, %v960_v9 }
 0x1f0   :  { %v530_v57 = vpop.f32.mrf.mxu1 }
 0x1f1   :  { %565 = vst [vmem:[%s1047_s5 + $0xb8] sm:$0xff] %v539_v56  ;;  %v531_v58 = vadd.f32 %v530_v57, %v960_v9 }
 0x1f3   :  { %559 = vst [vmem:[%s1047_s5 + $0x88] sm:$0xff] %v531_v58 }
 0x1f4   :  { %570 = vsyncpa [#allocation3], 1 }
 0x1f5   :  { %571 = vsyncpa [#allocation5], 1 }

// kernel: rnn_rollout.5
= control target key start
LH: loop header
LB: loop body
LE: loop exit
PB: predicated region body
PF: predicated region fallthrough
CT: control target
= control target key end

     0   :  { %s339_s1 = inlined_call_operand.vmem [shape: bf16[128,128], index: 1, kind: input, shape index: {}]   ;;  %s340_s0 = inlined_call_operand.vmem [shape: f32[64,128], index: 0, kind: input, shape index: {}]   ;;  %s341_s2 = inlined_call_operand.vmem [shape: f32[1,128], index: 2, kind: input, shape index: {}]   ;;  %s342_s3 = inlined_call_operand.vmem [shape: f32[64,128], index: 3, kind: output, shape index: {}]  }
   0x1   :  { %v236_v0 = vld [vmem:[%s339_s1 + $0x38] sm:$0xff]   ;;  %v237_v1 = vld [vmem:[%s339_s1 + $0x30] sm:$0xff]   ;;  %v238_v2 = vld [vmem:[%s339_s1 + $0x28] sm:$0xff]  }
   0x2   :  { %196 = vmatprep.subr.bf16.mxu0 %v236_v0  ;;  %220 = vmatprep.subr.bf16.mxu1 %v236_v0  ;;  %v239_v3 = vld [vmem:[%s339_s1 + $0x20] sm:$0xff]   ;;  %v16_v5 = vld [vmem:[%s340_s0 + $0x8] sm:$0xff]  ;;  %v240_v10 = vld [vmem:[%s339_s1 + $0x18] sm:$0xff]  }
   0x3   :  { %197 = vmatpush3.bf16.msra.mxu0 %v236_v0  ;;  %228 = vmatpush3.bf16.msra.mxu1 %v236_v0  ;;  %v15_v4 = vld [vmem:[%s340_s0] sm:$0xff]  ;;  %v20_v8 = vld [vmem:[%s340_s0 + $0x28] sm:$0xff]  ;;  %v241_v11 = vld [vmem:[%s339_s1 + $0x10] sm:$0xff]  }
   0x4   :  { %198 = vmatprep.subr.bf16.mxu0 %v237_v1  ;;  %221 = vmatprep.subr.bf16.mxu1 %v237_v1  ;;  %v19_v6 = vld [vmem:[%s340_s0 + $0x20] sm:$0xff]  ;;  %v23_v7 = vpack.c.bf16 %v16_v5, %v15_v4  ;;  %v242_v12 = vld [vmem:[%s339_s1 + $0x8] sm:$0xff]   ;;  %v17_v14 = vld [vmem:[%s340_s0 + $0x10] sm:$0xff] }
   0x5   :  { %v25_v9 = vpack.c.bf16 %v20_v8, %v19_v6  ;;  %v243_v13 = vld [vmem:[%s339_s1] sm:$0xff]   ;;  %v18_v15 = vld [vmem:[%s340_s0 + $0x18] sm:$0xff]  ;;  %v21_v16 = vld [vmem:[%s340_s0 + $0x30] sm:$0xff] }
   0x6   :  { %212 = vmatprep.mubr.bf16.mxu0 %v23_v7  ;;  %v22_v17 = vld [vmem:[%s340_s0 + $0x38] sm:$0xff]  ;;  %v24_v18 = vpack.c.bf16 %v18_v15, %v17_v14  ;;  %v175_v20 = vld [vmem:[%s341_s2] ss:$0 sm:$0xff] }
   0x7   :  { %199 = vmatpush3.bf16.msra.mxu0 %v237_v1  ;;  %229 = vmatpush3.bf16.msra.mxu1 %v237_v1  ;;  %v26_v19 = vpack.c.bf16 %v22_v17, %v21_v16 }
   0x8   :  { %200 = vmatprep.subr.bf16.mxu0 %v238_v2  ;;  %222 = vmatprep.subr.bf16.mxu1 %v238_v2 }
   0x9   :  { %216 = vmatprep.mubr.bf16.mxu1 %v25_v9 }
   0xb   :  { %201 = vmatpush3.bf16.msra.mxu0 %v238_v2  ;;  %230 = vmatpush3.bf16.msra.mxu1 %v238_v2 }
   0xc   :  { %202 = vmatprep.subr.bf16.mxu0 %v239_v3  ;;  %223 = vmatprep.subr.bf16.mxu1 %v239_v3 }
   0xf   :  { %203 = vmatpush3.bf16.msra.mxu0 %v239_v3  ;;  %231 = vmatpush3.bf16.msra.mxu1 %v239_v3 }
  0x10   :  { %204 = vmatprep.subr.bf16.mxu0 %v240_v10  ;;  %224 = vmatprep.subr.bf16.mxu1 %v240_v10 }
  0x13   :  { %205 = vmatpush3.bf16.msra.mxu0 %v240_v10  ;;  %232 = vmatpush3.bf16.msra.mxu1 %v240_v10 }
  0x14   :  { %206 = vmatprep.subr.bf16.mxu0 %v241_v11  ;;  %225 = vmatprep.subr.bf16.mxu1 %v241_v11 }
  0x17   :  { %207 = vmatpush3.bf16.msra.mxu0 %v241_v11  ;;  %233 = vmatpush3.bf16.msra.mxu1 %v241_v11 }
  0x18   :  { %208 = vmatprep.subr.bf16.mxu0 %v242_v12  ;;  %226 = vmatprep.subr.bf16.mxu1 %v242_v12 }
  0x1b   :  { %209 = vmatpush3.bf16.msra.mxu0 %v242_v12  ;;  %234 = vmatpush3.bf16.msra.mxu1 %v242_v12 }
  0x1c   :  { %210 = vmatprep.subr.bf16.mxu0 %v243_v13  ;;  %227 = vmatprep.subr.bf16.mxu1 %v243_v13 }
  0x1f   :  { %211 = vmatpush3.bf16.msra.mxu0 %v243_v13  ;;  %235 = vmatpush3.bf16.msra.mxu1 %v243_v13 }
  0x22   :  { %213 = vmatmul.mubr.bf16.vlgmr.msra.gmra.mxu0 %v24_v18  ;;  %217 = vmatmul.mubr.bf16.vlgmr.msra.gmra.mxu1 %v26_v19 }
  0xe2   :  { %v214_v21 = vpop.f32.mrf.mxu0  ;;  %v218_v22 = vpop.f32.mrf.mxu1 }
  0xe3   :  { %v141_v23 = vadd.f32 %v214_v21, %v175_v20  ;;  %v157_v24 = vadd.f32 %v218_v22, %v175_v20 }
  0xe4   :  { %v132_v25 = vpop.f32.mrf.mxu0  ;;  %v148_v26 = vpop.f32.mrf.mxu1 }
  0xe5   :  { %165 = vst [vmem:[%s342_s3 + $0x10] sm:$0xff] %v141_v23  ;;  %169 = vst [vmem:[%s342_s3 + $0x30] sm:$0xff] %v157_v24  ;;  %v133_v27 = vadd.f32 %v175_v20, %v132_v25  ;;  %v149_v28 = vadd.f32 %v175_v20, %v148_v26 }
  0xe6   :  { %v215_v29 = vpop.f32.mrf.mxu0  ;;  %v219_v30 = vpop.f32.mrf.mxu1 }
  0xe7   :  { %163 = vst [vmem:[%s342_s3] sm:$0xff] %v133_v27  ;;  %167 = vst [vmem:[%s342_s3 + $0x20] sm:$0xff] %v149_v28  ;;  %v144_v31 = vadd.f32 %v215_v29, %v175_v20  ;;  %v160_v32 = vadd.f32 %v219_v30, %v175_v20 }
  0xe8   :  { %v135_v33 = vpop.f32.mrf.mxu0  ;;  %v151_v34 = vpop.f32.mrf.mxu1 }
  0xe9   :  { %166 = vst [vmem:[%s342_s3 + $0x18] sm:$0xff] %v144_v31  ;;  %170 = vst [vmem:[%s342_s3 + $0x38] sm:$0xff] %v160_v32  ;;  %v136_v35 = vadd.f32 %v175_v20, %v135_v33  ;;  %v152_v36 = vadd.f32 %v175_v20, %v151_v34 }
  0xeb   :  { %164 = vst [vmem:[%s342_s3 + $0x8] sm:$0xff] %v136_v35  ;;  %168 = vst [vmem:[%s342_s3 + $0x28] sm:$0xff] %v152_v36 }

// kernel: rnn_rollout.4
= control target key start
LH: loop header
LB: loop body
LE: loop exit
PB: predicated region body
PF: predicated region fallthrough
CT: control target
= control target key end

     0   :  { %v1496_v1 = vmov 0.0   ;;  %v1497_v2 = vmov 0   ;;  %vm1498_vm0 = vmmov 0   ;;  %v63_v28 = vlaneseq  ;;  %s2121_s2 = inlined_call_operand.vmem [shape: bf16[128,384], index: 2, kind: input, shape index: {}]   ;;  %s2122_s1 = inlined_call_operand.vmem [shape: f32[8,128], index: 1, kind: input, shape index: {}]   ;;  %s2123_s3 = inlined_call_operand.vmem [shape: f32[1,384], index: 3, kind: input, shape index: {}]   ;;  %s2124_s0 = inlined_call_operand.vmem [shape: f32[8,8,384], index: 0, kind: input, shape index: {}]   ;;  %s2125_s4 = inlined_call_operand.vmem [shape: f32[8,8,128], index: 4, kind: output, shape index: {}]  }
   0x1   :  { %v1527_v0 = vld [vmem:[%s2121_s2 + $0xac] ss:$12 sps:$4 sm:$0xff]   ;;  %1209 = vmatprep.subr.bf16.mxu1 %v1496_v1  ;;  %238 = vmatprep.mubr.bf16.mxu0 %v1497_v2  ;;  %v1534_v3 = vld [vmem:[%s2121_s2 + $0xa8] ss:$12 sps:$4 sm:$0xff]   ;;  %v1548_v5 = vld [vmem:[%s2121_s2 + $0x90] ss:$12 sps:$4 sm:$0xff]  }
   0x2   :  { %1225 = vmatprep.mubr.msk.bf16.mxu1 %vm1498_vm0, %v1496_v1  ;;  %206 = vmatprep.subr.bf16.mxu0 %v1527_v0  ;;  %v1542_v4 = vld [vmem:[%s2121_s2 + $0x94] ss:$12 sps:$4 sm:$0xff]   ;;  %v1554_v6 = vld [vmem:[%s2121_s2 + $0x7c] ss:$12 sps:$4 sm:$0xff]   ;;  %v1560_v7 = vld [vmem:[%s2121_s2 + $0x78] ss:$12 sps:$4 sm:$0xff]  }
   0x3   :  { %207 = vmatpush1.bf16.msra.mxu0 %v1534_v3  ;;  %v1566_v8 = vld [vmem:[%s2121_s2 + $0x64] ss:$12 sps:$4 sm:$0xff]   ;;  %v1572_v9 = vld [vmem:[%s2121_s2 + $0x60] ss:$12 sps:$4 sm:$0xff]   ;;  %v1596_v13 = vld [vmem:[%s2121_s2 + $0x48] ss:$12 sps:$4 sm:$0xff]  }
   0x4   :  { %208 = vmatprep.subr.bf16.mxu0 %v1542_v4  ;;  %v1577_v10 = vld [vmem:[%s2121_s2 + $0xb0] ss:$12 sps:$4 sm:$0xff]   ;;  %v1583_v11 = vld [vmem:[%s2121_s2 + $0x4c] ss:$12 sps:$4 sm:$0xff]   ;;  %v1602_v14 = vld [vmem:[%s2121_s2 + $0x34] ss:$12 sps:$4 sm:$0xff]  }
   0x5   :  { %1210 = vmatpush3.bf16.msra.mxu1 %v1577_v10  ;;  %v1589_v12 = vld [vmem:[%s2121_s2 + $0x98] ss:$12 sps:$4 sm:$0xff]   ;;  %v1608_v15 = vld [vmem:[%s2121_s2 + $0x80] ss:$12 sps:$4 sm:$0xff]   ;;  %v1615_v16 = vld [vmem:[%s2121_s2 + $0x30] ss:$12 sps:$4 sm:$0xff]  }
   0x6   :  { %1211 = vmatprep.subr.bf16.mxu1 %v1496_v1  ;;  %v1621_v17 = vld [vmem:[%s2121_s2 + $0x1c] ss:$12 sps:$4 sm:$0xff]   ;;  %v1634_v19 = vld [vmem:[%s2121_s2 + $0x18] ss:$12 sps:$4 sm:$0xff]   ;;  %v1653_v22 = vld [vmem:[%s2121_s2] ss:$12 sps:$4 sm:$0xff]  }
   0x7   :  { %209 = vmatpush1.bf16.msra.mxu0 %v1548_v5  ;;  %v1627_v18 = vld [vmem:[%s2121_s2 + $0x68] ss:$12 sps:$4 sm:$0xff]   ;;  %v1640_v20 = vld [vmem:[%s2121_s2 + $0x4] ss:$12 sps:$4 sm:$0xff]   ;;  %v1676_v26 = vld [vmem:[%s2121_s2 + $0x20] ss:$12 sps:$4 sm:$0xff]  }
   0x8   :  { %210 = vmatprep.subr.bf16.mxu0 %v1554_v6  ;;  %v1646_v21 = vld [vmem:[%s2121_s2 + $0x50] ss:$12 sps:$4 sm:$0xff]   ;;  %v1658_v23 = vld [vmem:[%s2122_s1] sm:$0xff]  ;;  %v1686_v27 = vld [vmem:[%s2121_s2 + $0x8] ss:$12 sps:$4 sm:$0xff]   ;;  %v64_v29 = vshrl.u32 %v63_v28, 7 }
   0x9   :  { %1212 = vmatpush3.bf16.msra.mxu1 %v1589_v12  ;;  %v1665_v24 = vld [vmem:[%s2121_s2 + $0x38] ss:$12 sps:$4 sm:$0xff]   ;;  %v61_v25 = vpack.c.bf16 %v1658_v23, %v1658_v23  ;;  %v56_v31 = vld [vmem:[%s2123_s3] sm:$0x7]  ;;  %v59_v45 = vld [vmem:[%s2124_s0 + $0x8] sm:$0xff] }
   0xa   :  { %1213 = vmatprep.subr.bf16.mxu1 %v1496_v1  ;;  %v65_v30 = vsub.s32 0, %v64_v29  ;;  %v58_v33 = vld [vmem:[%s2124_s0] sm:$0xff]  ;;  %v69_v36 = vsub.s32 1, %v64_v29  ;;  %v73_v53 = vsub.s32 2, %v64_v29  ;;  %v60_v58 = vld [vmem:[%s2124_s0 + $0x10] sm:$0xff] }
   0xb   :  { %211 = vmatpush1.bf16.msra.mxu0 %v1560_v7 }
   0xc   :  { %212 = vmatprep.subr.bf16.mxu0 %v1566_v8  ;;  %v1726_v32 = vrot.slane %v56_v31, %v65_v30  ;;  %v1732_v41 = vrot.slane %v56_v31, %v69_v36  ;;  %v1738_v54 = vrot.slane %v56_v31, %v73_v53  ;;  %v1097_v53 = vld [vmem:[%s2124_s0 + $0x28] sm:$0xff] }
   0xd   :  { %1214 = vmatpush3.bf16.msra.mxu1 %v1608_v15 }
   0xe   :  { %1215 = vmatprep.subr.bf16.mxu1 %v1496_v1 }
   0xf   :  { %213 = vmatpush1.bf16.msra.mxu0 %v1572_v9 }
  0x10   :  { %214 = vmatprep.subr.bf16.mxu0 %v1583_v11 }
  0x11   :  { %1216 = vmatpush3.bf16.msra.mxu1 %v1627_v18 }
  0x12   :  { %1217 = vmatprep.subr.bf16.mxu1 %v1496_v1 }
  0x13   :  { %215 = vmatpush1.bf16.msra.mxu0 %v1596_v13 }
  0x14   :  { %216 = vmatprep.subr.bf16.mxu0 %v1602_v14 }
  0x15   :  { %1218 = vmatpush3.bf16.msra.mxu1 %v1646_v21 }
  0x16   :  { %1219 = vmatprep.subr.bf16.mxu1 %v1496_v1 }
  0x17   :  { %217 = vmatpush1.bf16.msra.mxu0 %v1615_v16 }
  0x18   :  { %218 = vmatprep.subr.bf16.mxu0 %v1621_v17 }
  0x19   :  { %1220 = vmatpush3.bf16.msra.mxu1 %v1665_v24 }
  0x1a   :  { %1221 = vmatprep.subr.bf16.mxu1 %v1496_v1 }
  0x1b   :  { %219 = vmatpush1.bf16.msra.mxu0 %v1634_v19 }
  0x1c   :  { %220 = vmatprep.subr.bf16.mxu0 %v1640_v20 }
  0x1d   :  { %1222 = vmatpush3.bf16.msra.mxu1 %v1676_v26 }
  0x1e   :  { %1223 = vmatprep.subr.bf16.mxu1 %v1496_v1 }
  0x1f   :  { %221 = vmatpush1.bf16.msra.mxu0 %v1653_v22 }
  0x20   :  { %313 = vmatprep.subr.bf16.mxu0 %v1527_v0 }
  0x21   :  { %1224 = vmatpush3.bf16.msra.mxu1 %v1686_v27 }
  0x22   :  { %239 = vmatmul.mubr.bf16.vlgmr.msra.gmra.mxu0 %v61_v25  ;;  %1229 = vmatprep.subr.bf16.mxu1 %v1496_v1 }
  0x23   :  { %314 = vmatpush1.bf16.msra.mxu0 %v1534_v3  ;;  %345 = vmatprep.mubr.bf16.mxu0 %v1497_v2 }
  0x24   :  { %315 = vmatprep.subr.bf16.mxu0 %v1542_v4  ;;  %1226 = vmatmul.mubr.bf16.vlgmr.msra.gmra.mxu1 %v61_v25 }
  0x25   :  { %1230 = vmatpush3.bf16.msra.mxu1 %v1577_v10  ;;  %1245 = vmatprep.mubr.msk.bf16.mxu1 %vm1498_vm0, %v1496_v1 }
  0x26   :  { %1231 = vmatprep.subr.bf16.mxu1 %v1496_v1 }
  0x27   :  { %316 = vmatpush1.bf16.msra.mxu0 %v1548_v5 }
  0x28   :  { %317 = vmatprep.subr.bf16.mxu0 %v1554_v6 }
  0x29   :  { %1232 = vmatpush3.bf16.msra.mxu1 %v1589_v12 }
  0x2a   :  { %1233 = vmatprep.subr.bf16.mxu1 %v1496_v1 }
  0x2b   :  { %318 = vmatpush1.bf16.msra.mxu0 %v1560_v7 }
  0x2c   :  { %319 = vmatprep.subr.bf16.mxu0 %v1566_v8 }
  0x2d   :  { %1234 = vmatpush3.bf16.msra.mxu1 %v1608_v15 }
  0x2e   :  { %1235 = vmatprep.subr.bf16.mxu1 %v1496_v1 }
  0x2f   :  { %320 = vmatpush1.bf16.msra.mxu0 %v1572_v9 }
  0x30   :  { %321 = vmatprep.subr.bf16.mxu0 %v1583_v11 }
  0x31   :  { %1236 = vmatpush3.bf16.msra.mxu1 %v1627_v18 }
  0x32   :  { %1237 = vmatprep.subr.bf16.mxu1 %v1496_v1 }
  0x33   :  { %322 = vmatpush1.bf16.msra.mxu0 %v1596_v13 }
  0x34   :  { %323 = vmatprep.subr.bf16.mxu0 %v1602_v14 }
  0x35   :  { %1238 = vmatpush3.bf16.msra.mxu1 %v1646_v21 }
  0x36   :  { %1239 = vmatprep.subr.bf16.mxu1 %v1496_v1 }
  0x37   :  { %324 = vmatpush1.bf16.msra.mxu0 %v1615_v16 }
  0x38   :  { %325 = vmatprep.subr.bf16.mxu0 %v1621_v17 }
  0x39   :  { %1240 = vmatpush3.bf16.msra.mxu1 %v1665_v24 }
  0x3a   :  { %1241 = vmatprep.subr.bf16.mxu1 %v1496_v1 }
  0x3b   :  { %326 = vmatpush1.bf16.msra.mxu0 %v1634_v19 }
  0x3c   :  { %327 = vmatprep.subr.bf16.mxu0 %v1640_v20 }
  0x3d   :  { %1242 = vmatpush3.bf16.msra.mxu1 %v1676_v26 }
  0x3e   :  { %1243 = vmatprep.subr.bf16.mxu1 %v1496_v1 }
  0x3f   :  { %328 = vmatpush1.bf16.msra.mxu0 %v1653_v22 }
  0x40   :  { %421 = vmatprep.subr.bf16.mxu0 %v1527_v0 }
  0x41   :  { %1244 = vmatpush3.bf16.msra.mxu1 %v1686_v27 }
  0x42   :  { %1249 = vmatprep.subr.bf16.mxu1 %v1496_v1 }
  0xe2   :  { %v240_v34 = vpop.f32.mrf.mxu0 }
  0xe3   :  { %v241_v35 = vadd.f32 %v240_v34, %v1726_v32 }
  0xe4   :  { %v242_v37 = vpop.f32.mrf.mxu0  ;;  %v281_v44 = vpop.f32.mrf.mxu1 }
  0xe5   :  { %v287_v38 = vadd.f32 %v241_v35, %v58_v33  ;;  %v243_v43 = vadd.f32 %v242_v37, %v1732_v41  ;;  %v282_v55 = vadd.f32 %v281_v44, %v1738_v54 }
  0xe6   :  { %v244_v39 = vpop.f32.mrf.mxu0  ;;  %v1227_v46 = vpop.f32.mrf.mxu1 }
  0xe7   :  { %v1093_v40 = vmul.f32 -1.442695, %v287_v38  ;;  %v294_v47 = vadd.f32 %v243_v43, %v59_v45  ;;  %v1096_v45 = vld [vmem:[%s2124_s0 + $0x20] sm:$0xff] }
  0xe8   :  { %v245_v42 = vpop.f32.mrf.mxu0  ;;  %v284_v48 = vpop.f32.mrf.mxu1 }
  0xe9   :  { %1404 = vpow2.f32 %v1093_v40  ;;  %v1094_v50 = vmul.f32 -1.442695, %v294_v47 }
  0xea   :  { %v1228_v49 = vpop.f32.mrf.mxu1 }
  0xeb   :  { %1406 = vpow2.f32 %v1094_v50 }
  0xf6   :  { %v1405_v51 = vpop.eup %1404 }
  0xf7   :  { %v291_v52 = vadd.f32 1.0, %v1405_v51 }
  0xf8   :  { %v1407_v56 = vpop.eup %1406 }
  0xf9   :  { %1408 = vrcp.f32 %v291_v52  ;;  %v298_v60 = vadd.f32 1.0, %v1407_v56 }
 0x106   :  { %v1409_v57 = vpop.eup %1408 }
 0x107   :  { %v301_v59 = vmul.f32 %v1409_v57, %v282_v55 }
 0x109   :  { %v302_v61 = vadd.f32 %v301_v59, %v60_v58 }
 0x10b   :  { %1410 = vtanh.f32 %v302_v61 }
 0x10c   :  { %1412 = vrcp.f32 %v298_v60 }
 0x118   :  { %v1411_v62 = vpop.eup %1410 }
 0x119   :  { %v304_v63 = vsub.f32 %v1658_v23, %v1411_v62  ;;  %v1413_v25 = vpop.eup %1412  ;;  %v1095_v23 = vld [vmem:[%s2124_s0 + $0x18] sm:$0xff] }
 0x11b   :  { %v305_v28 = vmul.f32 %v1413_v25, %v304_v63  ;;  %v1101_v25 = vld [vmem:[%s2124_s0 + $0x30] sm:$0xff] }
 0x11d   :  { %v1745_v29 = vadd.f32 %v1411_v62, %v305_v28 }
 0x11f   :  { %307 = vst [vmem:[%s2125_s4] sm:$0xff] %v1745_v29  ;;  %v312_v30 = vpack.c.bf16 %v1745_v29, %v1745_v29 }
 0x121   :  { %346 = vmatmul.mubr.bf16.vlgmr.msra.gmra.mxu0 %v312_v30  ;;  %1246 = vmatmul.mubr.bf16.vlgmr.msra.gmra.mxu1 %v312_v30 }
 0x122   :  { %422 = vmatpush1.bf16.msra.mxu0 %v1534_v3  ;;  %1250 = vmatpush3.bf16.msra.mxu1 %v1577_v10 }
 0x123   :  { %423 = vmatprep.subr.bf16.mxu0 %v1542_v4  ;;  %1251 = vmatprep.subr.bf16.mxu1 %v1496_v1 }
 0x124   :  { %453 = vmatprep.mubr.bf16.mxu0 %v1497_v2  ;;  %1265 = vmatprep.mubr.msk.bf16.mxu1 %vm1498_vm0, %v1496_v1 }
 0x126   :  { %424 = vmatpush1.bf16.msra.mxu0 %v1548_v5  ;;  %1252 = vmatpush3.bf16.msra.mxu1 %v1589_v12 }
 0x127   :  { %425 = vmatprep.subr.bf16.mxu0 %v1554_v6  ;;  %1253 = vmatprep.subr.bf16.mxu1 %v1496_v1 }
 0x12a   :  { %426 = vmatpush1.bf16.msra.mxu0 %v1560_v7  ;;  %1254 = vmatpush3.bf16.msra.mxu1 %v1608_v15 }
 0x12b   :  { %427 = vmatprep.subr.bf16.mxu0 %v1566_v8  ;;  %1255 = vmatprep.subr.bf16.mxu1 %v1496_v1 }
 0x12e   :  { %428 = vmatpush1.bf16.msra.mxu0 %v1572_v9  ;;  %1256 = vmatpush3.bf16.msra.mxu1 %v1627_v18 }
 0x12f   :  { %429 = vmatprep.subr.bf16.mxu0 %v1583_v11  ;;  %1257 = vmatprep.subr.bf16.mxu1 %v1496_v1 }
 0x132   :  { %430 = vmatpush1.bf16.msra.mxu0 %v1596_v13  ;;  %1258 = vmatpush3.bf16.msra.mxu1 %v1646_v21 }
 0x133   :  { %431 = vmatprep.subr.bf16.mxu0 %v1602_v14  ;;  %1259 = vmatprep.subr.bf16.mxu1 %v1496_v1 }
 0x136   :  { %432 = vmatpush1.bf16.msra.mxu0 %v1615_v16  ;;  %1260 = vmatpush3.bf16.msra.mxu1 %v1665_v24 }
 0x137   :  { %433 = vmatprep.subr.bf16.mxu0 %v1621_v17  ;;  %1261 = vmatprep.subr.bf16.mxu1 %v1496_v1 }
 0x13a   :  { %434 = vmatpush1.bf16.msra.mxu0 %v1634_v19  ;;  %1262 = vmatpush3.bf16.msra.mxu1 %v1676_v26 }
 0x13b   :  { %435 = vmatprep.subr.bf16.mxu0 %v1640_v20  ;;  %1263 = vmatprep.subr.bf16.mxu1 %v1496_v1 }
 0x13e   :  { %436 = vmatpush1.bf16.msra.mxu0 %v1653_v22  ;;  %1264 = vmatpush3.bf16.msra.mxu1 %v1686_v27 }
 0x13f   :  { %529 = vmatprep.subr.bf16.mxu0 %v1527_v0  ;;  %1269 = vmatprep.subr.bf16.mxu1 %v1496_v1 }
 0x1e1   :  { %v347_v31 = vpop.f32.mrf.mxu0  ;;  %v388_v33 = vpop.f32.mrf.mxu1 }
 0x1e2   :  { %v348_v34 = vadd.f32 %v347_v31, %v1726_v32  ;;  %v389_v51 = vadd.f32 %v388_v33, %v1738_v54 }
 0x1e3   :  { %v349_v35 = vpop.f32.mrf.mxu0  ;;  %v1247_v36 = vpop.f32.mrf.mxu1 }
 0x1e4   :  { %v394_v37 = vadd.f32 %v1095_v23, %v348_v34  ;;  %v350_v44 = vadd.f32 %v349_v35, %v1732_v41 }
 0x1e5   :  { %v351_v38 = vpop.f32.mrf.mxu0  ;;  %v391_v39 = vpop.f32.mrf.mxu1 }
 0x1e6   :  { %v1098_v40 = vmul.f32 -1.442695, %v394_v37  ;;  %v401_v46 = vadd.f32 %v1096_v45, %v350_v44 }
 0x1e7   :  { %v352_v42 = vpop.f32.mrf.mxu0  ;;  %v1248_v43 = vpop.f32.mrf.mxu1 }
 0x1e8   :  { %1414 = vpow2.f32 %v1098_v40  ;;  %v1099_v47 = vmul.f32 -1.442695, %v401_v46  ;;  %v1102_v40 = vld [vmem:[%s2124_s0 + $0x38] sm:$0xff] }
 0x1ea   :  { %1416 = vpow2.f32 %v1099_v47 }
 0x1f5   :  { %v1415_v48 = vpop.eup %1414 }
 0x1f6   :  { %v398_v49 = vadd.f32 1.0, %v1415_v48 }
 0x1f7   :  { %v1417_v50 = vpop.eup %1416 }
 0x1f8   :  { %1418 = vrcp.f32 %v398_v49  ;;  %v405_v57 = vadd.f32 1.0, %v1417_v50  ;;  %v1103_v49 = vld [vmem:[%s2124_s0 + $0x40] sm:$0xff] }
 0x205   :  { %v1419_v52 = vpop.eup %1418 }
 0x206   :  { %v408_v55 = vmul.f32 %v1419_v52, %v389_v51 }
 0x208   :  { %v409_v56 = vadd.f32 %v1097_v53, %v408_v55 }
 0x20a   :  { %1420 = vtanh.f32 %v409_v56 }
 0x20b   :  { %1422 = vrcp.f32 %v405_v57 }
 0x217   :  { %v1421_v58 = vpop.eup %1420 }
 0x218   :  { %v411_v59 = vsub.f32 %v1745_v29, %v1421_v58  ;;  %v1423_v60 = vpop.eup %1422 }
 0x21a   :  { %v412_v61 = vmul.f32 %v1423_v60, %v411_v59  ;;  %v1107_v60 = vld [vmem:[%s2124_s0 + $0x48] sm:$0xff] }
 0x21c   :  { %v1801_v62 = vadd.f32 %v1421_v58, %v412_v61 }
 0x21e   :  { %1100 = vst [vmem:[%s2125_s4 + $0x8] sm:$0xff] %v1801_v62  ;;  %v420_v63 = vpack.c.bf16 %v1801_v62, %v1801_v62 }
 0x220   :  { %454 = vmatmul.mubr.bf16.vlgmr.msra.gmra.mxu0 %v420_v63  ;;  %1266 = vmatmul.mubr.bf16.vlgmr.msra.gmra.mxu1 %v420_v63 }
 0x221   :  { %530 = vmatpush1.bf16.msra.mxu0 %v1534_v3  ;;  %1270 = vmatpush3.bf16.msra.mxu1 %v1577_v10 }
 0x222   :  { %531 = vmatprep.subr.bf16.mxu0 %v1542_v4  ;;  %1271 = vmatprep.subr.bf16.mxu1 %v1496_v1 }
 0x223   :  { %561 = vmatprep.mubr.bf16.mxu0 %v1497_v2  ;;  %1285 = vmatprep.mubr.msk.bf16.mxu1 %vm1498_vm0, %v1496_v1 }
 0x225   :  { %532 = vmatpush1.bf16.msra.mxu0 %v1548_v5  ;;  %1272 = vmatpush3.bf16.msra.mxu1 %v1589_v12 }
 0x226   :  { %533 = vmatprep.subr.bf16.mxu0 %v1554_v6  ;;  %1273 = vmatprep.subr.bf16.mxu1 %v1496_v1 }
 0x229   :  { %534 = vmatpush1.bf16.msra.mxu0 %v1560_v7  ;;  %1274 = vmatpush3.bf16.msra.mxu1 %v1608_v15 }
 0x22a   :  { %535 = vmatprep.subr.bf16.mxu0 %v1566_v8  ;;  %1275 = vmatprep.subr.bf16.mxu1 %v1496_v1 }
 0x22d   :  { %536 = vmatpush1.bf16.msra.mxu0 %v1572_v9  ;;  %1276 = vmatpush3.bf16.msra.mxu1 %v1627_v18 }
 0x22e   :  { %537 = vmatprep.subr.bf16.mxu0 %v1583_v11  ;;  %1277 = vmatprep.subr.bf16.mxu1 %v1496_v1 }
 0x231   :  { %538 = vmatpush1.bf16.msra.mxu0 %v1596_v13  ;;  %1278 = vmatpush3.bf16.msra.mxu1 %v1646_v21 }
 0x232   :  { %539 = vmatprep.subr.bf16.mxu0 %v1602_v14  ;;  %1279 = vmatprep.subr.bf16.mxu1 %v1496_v1 }
 0x235   :  { %540 = vmatpush1.bf16.msra.mxu0 %v1615_v16  ;;  %1280 = vmatpush3.bf16.msra.mxu1 %v1665_v24 }
 0x236   :  { %541 = vmatprep.subr.bf16.mxu0 %v1621_v17  ;;  %1281 = vmatprep.subr.bf16.mxu1 %v1496_v1 }
 0x239   :  { %542 = vmatpush1.bf16.msra.mxu0 %v1634_v19  ;;  %1282 = vmatpush3.bf16.msra.mxu1 %v1676_v26 }
 0x23a   :  { %543 = vmatprep.subr.bf16.mxu0 %v1640_v20  ;;  %1283 = vmatprep.subr.bf16.mxu1 %v1496_v1 }
 0x23d   :  { %544 = vmatpush1.bf16.msra.mxu0 %v1653_v22  ;;  %1284 = vmatpush3.bf16.msra.mxu1 %v1686_v27 }
 0x23e   :  { %637 = vmatprep.subr.bf16.mxu0 %v1527_v0  ;;  %1289 = vmatprep.subr.bf16.mxu1 %v1496_v1 }
 0x2e0   :  { %v455_v28 = vpop.f32.mrf.mxu0  ;;  %v496_v29 = vpop.f32.mrf.mxu1 }
 0x2e1   :  { %v456_v30 = vadd.f32 %v455_v28, %v1726_v32  ;;  %v497_v47 = vadd.f32 %v496_v29, %v1738_v54 }
 0x2e2   :  { %v457_v23 = vpop.f32.mrf.mxu0  ;;  %v1267_v31 = vpop.f32.mrf.mxu1 }
 0x2e3   :  { %v502_v33 = vadd.f32 %v1101_v25, %v456_v30  ;;  %v458_v39 = vadd.f32 %v457_v23, %v1732_v41 }
 0x2e4   :  { %v459_v34 = vpop.f32.mrf.mxu0  ;;  %v499_v35 = vpop.f32.mrf.mxu1 }
 0x2e5   :  { %v1104_v36 = vmul.f32 -1.442695, %v502_v33  ;;  %v509_v42 = vadd.f32 %v1102_v40, %v458_v39 }
 0x2e6   :  { %v460_v37 = vpop.f32.mrf.mxu0  ;;  %v1268_v38 = vpop.f32.mrf.mxu1 }
 0x2e7   :  { %1424 = vpow2.f32 %v1104_v36  ;;  %v1105_v43 = vmul.f32 -1.442695, %v509_v42  ;;  %v1108_v36 = vld [vmem:[%s2124_s0 + $0x50] sm:$0xff] }
 0x2e9   :  { %1426 = vpow2.f32 %v1105_v43 }
 0x2f4   :  { %v1425_v44 = vpop.eup %1424 }
 0x2f5   :  { %v506_v45 = vadd.f32 1.0, %v1425_v44 }
 0x2f6   :  { %v1427_v46 = vpop.eup %1426 }
 0x2f7   :  { %1428 = vrcp.f32 %v506_v45  ;;  %v513_v52 = vadd.f32 1.0, %v1427_v46  ;;  %v1109_v45 = vld [vmem:[%s2124_s0 + $0x58] sm:$0xff] }
 0x304   :  { %v1429_v48 = vpop.eup %1428 }
 0x305   :  { %v516_v50 = vmul.f32 %v1429_v48, %v497_v47 }
 0x307   :  { %v517_v51 = vadd.f32 %v1103_v49, %v516_v50 }
 0x309   :  { %1430 = vtanh.f32 %v517_v51 }
 0x30a   :  { %1432 = vrcp.f32 %v513_v52 }
 0x316   :  { %v1431_v53 = vpop.eup %1430 }
 0x317   :  { %v519_v55 = vsub.f32 %v1801_v62, %v1431_v53  ;;  %v1433_v56 = vpop.eup %1432 }
 0x319   :  { %v520_v57 = vmul.f32 %v1433_v56, %v519_v55  ;;  %v1113_v56 = vld [vmem:[%s2124_s0 + $0x60] sm:$0xff] }
 0x31b   :  { %v1857_v58 = vadd.f32 %v1431_v53, %v520_v57 }
 0x31d   :  { %1106 = vst [vmem:[%s2125_s4 + $0x10] sm:$0xff] %v1857_v58  ;;  %v528_v59 = vpack.c.bf16 %v1857_v58, %v1857_v58 }
 0x31f   :  { %562 = vmatmul.mubr.bf16.vlgmr.msra.gmra.mxu0 %v528_v59  ;;  %1286 = vmatmul.mubr.bf16.vlgmr.msra.gmra.mxu1 %v528_v59 }
 0x320   :  { %638 = vmatpush1.bf16.msra.mxu0 %v1534_v3  ;;  %1290 = vmatpush3.bf16.msra.mxu1 %v1577_v10 }
 0x321   :  { %639 = vmatprep.subr.bf16.mxu0 %v1542_v4  ;;  %1291 = vmatprep.subr.bf16.mxu1 %v1496_v1 }
 0x322   :  { %669 = vmatprep.mubr.bf16.mxu0 %v1497_v2  ;;  %1305 = vmatprep.mubr.msk.bf16.mxu1 %vm1498_vm0, %v1496_v1 }
 0x324   :  { %640 = vmatpush1.bf16.msra.mxu0 %v1548_v5  ;;  %1292 = vmatpush3.bf16.msra.mxu1 %v1589_v12 }
 0x325   :  { %641 = vmatprep.subr.bf16.mxu0 %v1554_v6  ;;  %1293 = vmatprep.subr.bf16.mxu1 %v1496_v1 }
 0x328   :  { %642 = vmatpush1.bf16.msra.mxu0 %v1560_v7  ;;  %1294 = vmatpush3.bf16.msra.mxu1 %v1608_v15 }
 0x329   :  { %643 = vmatprep.subr.bf16.mxu0 %v1566_v8  ;;  %1295 = vmatprep.subr.bf16.mxu1 %v1496_v1 }
 0x32c   :  { %644 = vmatpush1.bf16.msra.mxu0 %v1572_v9  ;;  %1296 = vmatpush3.bf16.msra.mxu1 %v1627_v18 }
 0x32d   :  { %645 = vmatprep.subr.bf16.mxu0 %v1583_v11  ;;  %1297 = vmatprep.subr.bf16.mxu1 %v1496_v1 }
 0x330   :  { %646 = vmatpush1.bf16.msra.mxu0 %v1596_v13  ;;  %1298 = vmatpush3.bf16.msra.mxu1 %v1646_v21 }
 0x331   :  { %647 = vmatprep.subr.bf16.mxu0 %v1602_v14  ;;  %1299 = vmatprep.subr.bf16.mxu1 %v1496_v1 }
 0x334   :  { %648 = vmatpush1.bf16.msra.mxu0 %v1615_v16  ;;  %1300 = vmatpush3.bf16.msra.mxu1 %v1665_v24 }
 0x335   :  { %649 = vmatprep.subr.bf16.mxu0 %v1621_v17  ;;  %1301 = vmatprep.subr.bf16.mxu1 %v1496_v1 }
 0x338   :  { %650 = vmatpush1.bf16.msra.mxu0 %v1634_v19  ;;  %1302 = vmatpush3.bf16.msra.mxu1 %v1676_v26 }
 0x339   :  { %651 = vmatprep.subr.bf16.mxu0 %v1640_v20  ;;  %1303 = vmatprep.subr.bf16.mxu1 %v1496_v1 }
 0x33c   :  { %652 = vmatpush1.bf16.msra.mxu0 %v1653_v22  ;;  %1304 = vmatpush3.bf16.msra.mxu1 %v1686_v27 }
 0x33d   :  { %745 = vmatprep.subr.bf16.mxu0 %v1527_v0  ;;  %1309 = vmatprep.subr.bf16.mxu1 %v1496_v1 }
 0x3df   :  { %v563_v61 = vpop.f32.mrf.mxu0  ;;  %v604_v62 = vpop.f32.mrf.mxu1 }
 0x3e0   :  { %v564_v63 = vadd.f32 %v563_v61, %v1726_v32  ;;  %v605_v43 = vadd.f32 %v604_v62, %v1738_v54 }
 0x3e1   :  { %v565_v25 = vpop.f32.mrf.mxu0  ;;  %v1287_v28 = vpop.f32.mrf.mxu1 }
 0x3e2   :  { %v610_v29 = vadd.f32 %v1107_v60, %v564_v63  ;;  %v566_v35 = vadd.f32 %v565_v25, %v1732_v41 }
 0x3e3   :  { %v567_v30 = vpop.f32.mrf.mxu0  ;;  %v607_v23 = vpop.f32.mrf.mxu1 }
 0x3e4   :  { %v1110_v31 = vmul.f32 -1.442695, %v610_v29  ;;  %v617_v37 = vadd.f32 %v1108_v36, %v566_v35 }
 0x3e5   :  { %v568_v33 = vpop.f32.mrf.mxu0  ;;  %v1288_v34 = vpop.f32.mrf.mxu1 }
 0x3e6   :  { %1434 = vpow2.f32 %v1110_v31  ;;  %v1111_v38 = vmul.f32 -1.442695, %v617_v37  ;;  %v1114_v31 = vld [vmem:[%s2124_s0 + $0x68] sm:$0xff] }
 0x3e8   :  { %1436 = vpow2.f32 %v1111_v38 }
 0x3f3   :  { %v1435_v39 = vpop.eup %1434 }
 0x3f4   :  { %v614_v40 = vadd.f32 1.0, %v1435_v39 }
 0x3f5   :  { %v1437_v42 = vpop.eup %1436 }
 0x3f6   :  { %1438 = vrcp.f32 %v614_v40  ;;  %v621_v48 = vadd.f32 1.0, %v1437_v42  ;;  %v1115_v40 = vld [vmem:[%s2124_s0 + $0x70] sm:$0xff] }
 0x403   :  { %v1439_v44 = vpop.eup %1438 }
 0x404   :  { %v624_v46 = vmul.f32 %v1439_v44, %v605_v43 }
 0x406   :  { %v625_v47 = vadd.f32 %v1109_v45, %v624_v46 }
 0x408   :  { %1440 = vtanh.f32 %v625_v47 }
 0x409   :  { %1442 = vrcp.f32 %v621_v48 }
 0x415   :  { %v1441_v49 = vpop.eup %1440 }
 0x416   :  { %v627_v50 = vsub.f32 %v1857_v58, %v1441_v49  ;;  %v1443_v51 = vpop.eup %1442 }
 0x418   :  { %v628_v52 = vmul.f32 %v1443_v51, %v627_v50  ;;  %v1120_v51 = vld [vmem:[%s2124_s0 + $0x80] sm:$0xff] }
 0x41a   :  { %v1913_v53 = vadd.f32 %v1441_v49, %v628_v52 }
 0x41c   :  { %1112 = vst [vmem:[%s2125_s4 + $0x18] sm:$0xff] %v1913_v53  ;;  %v636_v55 = vpack.c.bf16 %v1913_v53, %v1913_v53 }
 0x41e   :  { %670 = vmatmul.mubr.bf16.vlgmr.msra.gmra.mxu0 %v636_v55  ;;  %1306 = vmatmul.mubr.bf16.vlgmr.msra.gmra.mxu1 %v636_v55 }
 0x41f   :  { %746 = vmatpush1.bf16.msra.mxu0 %v1534_v3  ;;  %1310 = vmatpush3.bf16.msra.mxu1 %v1577_v10 }
 0x420   :  { %747 = vmatprep.subr.bf16.mxu0 %v1542_v4  ;;  %1311 = vmatprep.subr.bf16.mxu1 %v1496_v1 }
 0x421   :  { %777 = vmatprep.mubr.bf16.mxu0 %v1497_v2  ;;  %1325 = vmatprep.mubr.msk.bf16.mxu1 %vm1498_vm0, %v1496_v1 }
 0x423   :  { %748 = vmatpush1.bf16.msra.mxu0 %v1548_v5  ;;  %1312 = vmatpush3.bf16.msra.mxu1 %v1589_v12 }
 0x424   :  { %749 = vmatprep.subr.bf16.mxu0 %v1554_v6  ;;  %1313 = vmatprep.subr.bf16.mxu1 %v1496_v1 }
 0x427   :  { %750 = vmatpush1.bf16.msra.mxu0 %v1560_v7  ;;  %1314 = vmatpush3.bf16.msra.mxu1 %v1608_v15 }
 0x428   :  { %751 = vmatprep.subr.bf16.mxu0 %v1566_v8  ;;  %1315 = vmatprep.subr.bf16.mxu1 %v1496_v1 }
 0x42b   :  { %752 = vmatpush1.bf16.msra.mxu0 %v1572_v9  ;;  %1316 = vmatpush3.bf16.msra.mxu1 %v1627_v18 }
 0x42c   :  { %753 = vmatprep.subr.bf16.mxu0 %v1583_v11  ;;  %1317 = vmatprep.subr.bf16.mxu1 %v1496_v1 }
 0x42f   :  { %754 = vmatpush1.bf16.msra.mxu0 %v1596_v13  ;;  %1318 = vmatpush3.bf16.msra.mxu1 %v1646_v21 }
 0x430   :  { %755 = vmatprep.subr.bf16.mxu0 %v1602_v14  ;;  %1319 = vmatprep.subr.bf16.mxu1 %v1496_v1 }
 0x433   :  { %756 = vmatpush1.bf16.msra.mxu0 %v1615_v16  ;;  %1320 = vmatpush3.bf16.msra.mxu1 %v1665_v24 }
 0x434   :  { %757 = vmatprep.subr.bf16.mxu0 %v1621_v17  ;;  %1321 = vmatprep.subr.bf16.mxu1 %v1496_v1 }
 0x437   :  { %758 = vmatpush1.bf16.msra.mxu0 %v1634_v19  ;;  %1322 = vmatpush3.bf16.msra.mxu1 %v1676_v26 }
 0x438   :  { %759 = vmatprep.subr.bf16.mxu0 %v1640_v20  ;;  %1323 = vmatprep.subr.bf16.mxu1 %v1496_v1 }
 0x43b   :  { %760 = vmatpush1.bf16.msra.mxu0 %v1653_v22  ;;  %1324 = vmatpush3.bf16.msra.mxu1 %v1686_v27 }
 0x43c   :  { %853 = vmatprep.subr.bf16.mxu0 %v1527_v0  ;;  %1329 = vmatprep.subr.bf16.mxu1 %v1496_v1 }
 0x4de   :  { %v671_v57 = vpop.f32.mrf.mxu0  ;;  %v712_v58 = vpop.f32.mrf.mxu1 }
 0x4df   :  { %v672_v59 = vadd.f32 %v671_v57, %v1726_v32  ;;  %v713_v38 = vadd.f32 %v712_v58, %v1738_v54 }
 0x4e0   :  { %v673_v60 = vpop.f32.mrf.mxu0  ;;  %v1307_v61 = vpop.f32.mrf.mxu1 }
 0x4e1   :  { %v718_v62 = vadd.f32 %v1113_v56, %v672_v59  ;;  %v674_v23 = vadd.f32 %v673_v60, %v1732_v41  ;;  %v1121_v60 = vld [vmem:[%s2124_s0 + $0x88] sm:$0xff] }
 0x4e2   :  { %v675_v63 = vpop.f32.mrf.mxu0  ;;  %v715_v25 = vpop.f32.mrf.mxu1 }
 0x4e3   :  { %v1116_v28 = vmul.f32 -1.442695, %v718_v62  ;;  %v725_v33 = vadd.f32 %v1114_v31, %v674_v23 }
 0x4e4   :  { %v676_v29 = vpop.f32.mrf.mxu0  ;;  %v1308_v30 = vpop.f32.mrf.mxu1 }
 0x4e5   :  { %1444 = vpow2.f32 %v1116_v28  ;;  %v1117_v34 = vmul.f32 -1.442695, %v725_v33  ;;  %v1484_v33 = vld [vmem:[%s2121_s2 + $0xa8] ss:$12 sps:$4 sm:$0xff]  }
 0x4e7   :  { %1446 = vpow2.f32 %v1117_v34  ;;  %v1485_v34 = vld [vmem:[%s2121_s2 + $0xb0] ss:$12 sps:$4 sm:$0xff]  }
 0x4f2   :  { %v1445_v35 = vpop.eup %1444 }
 0x4f3   :  { %v722_v36 = vadd.f32 1.0, %v1445_v35  ;;  %v1486_v35 = vld [vmem:[%s2121_s2 + $0x94] ss:$12 sps:$4 sm:$0xff]  }
 0x4f4   :  { %v1447_v37 = vpop.eup %1446 }
 0x4f5   :  { %1448 = vrcp.f32 %v722_v36  ;;  %v729_v44 = vadd.f32 1.0, %v1447_v37  ;;  %v1487_v36 = vld [vmem:[%s2121_s2 + $0x90] ss:$12 sps:$4 sm:$0xff]   ;;  %v1488_v37 = vld [vmem:[%s2121_s2 + $0x98] ss:$12 sps:$4 sm:$0xff]  }
 0x502   :  { %v1449_v39 = vpop.eup %1448 }
 0x503   :  { %v732_v42 = vmul.f32 %v1449_v39, %v713_v38  ;;  %v1489_v38 = vld [vmem:[%s2121_s2 + $0x7c] ss:$12 sps:$4 sm:$0xff]   ;;  %v1491_v39 = vld [vmem:[%s2121_s2 + $0x64] ss:$12 sps:$4 sm:$0xff]  }
 0x505   :  { %v733_v43 = vadd.f32 %v1115_v40, %v732_v42  ;;  %v1492_v40 = vld [vmem:[%s2121_s2 + $0x60] ss:$12 sps:$4 sm:$0xff]  }
 0x506   :  { %v1493_v42 = vld [vmem:[%s2121_s2 + $0x4c] ss:$12 sps:$4 sm:$0xff]  }
 0x507   :  { %1450 = vtanh.f32 %v733_v43  ;;  %v1495_v43 = vld [vmem:[%s2121_s2 + $0x34] ss:$12 sps:$4 sm:$0xff]  }
 0x508   :  { %1452 = vrcp.f32 %v729_v44 }
 0x514   :  { %v1451_v45 = vpop.eup %1450 }
 0x515   :  { %v735_v46 = vsub.f32 %v1913_v53, %v1451_v45  ;;  %v1453_v47 = vpop.eup %1452 }
 0x517   :  { %v736_v48 = vmul.f32 %v1453_v47, %v735_v46 }
 0x519   :  { %v1969_v49 = vadd.f32 %v1451_v45, %v736_v48 }
 0x51b   :  { %1118 = vst [vmem:[%s2125_s4 + $0x20] sm:$0xff] %v1969_v49  ;;  %v744_v50 = vpack.c.bf16 %v1969_v49, %v1969_v49 }
 0x51d   :  { %778 = vmatmul.mubr.bf16.vlgmr.msra.gmra.mxu0 %v744_v50  ;;  %1326 = vmatmul.mubr.bf16.vlgmr.msra.gmra.mxu1 %v744_v50 }
 0x51e   :  { %854 = vmatpush1.bf16.msra.mxu0 %v1534_v3  ;;  %1330 = vmatpush3.bf16.msra.mxu1 %v1577_v10  ;;  %v1119_v3 = vld [vmem:[%s2124_s0 + $0x78] sm:$0xff] }
 0x51f   :  { %855 = vmatprep.subr.bf16.mxu0 %v1542_v4  ;;  %1331 = vmatprep.subr.bf16.mxu1 %v1496_v1 }
 0x520   :  { %885 = vmatprep.mubr.bf16.mxu0 %v1497_v2  ;;  %1345 = vmatprep.mubr.msk.bf16.mxu1 %vm1498_vm0, %v1496_v1 }
 0x522   :  { %856 = vmatpush1.bf16.msra.mxu0 %v1548_v5  ;;  %1332 = vmatpush3.bf16.msra.mxu1 %v1589_v12 }
 0x523   :  { %857 = vmatprep.subr.bf16.mxu0 %v1554_v6  ;;  %1333 = vmatprep.subr.bf16.mxu1 %v1496_v1 }
 0x526   :  { %858 = vmatpush1.bf16.msra.mxu0 %v1560_v7  ;;  %1334 = vmatpush3.bf16.msra.mxu1 %v1608_v15 }
 0x527   :  { %859 = vmatprep.subr.bf16.mxu0 %v1566_v8  ;;  %1335 = vmatprep.subr.bf16.mxu1 %v1496_v1 }
 0x52a   :  { %860 = vmatpush1.bf16.msra.mxu0 %v1572_v9  ;;  %1336 = vmatpush3.bf16.msra.mxu1 %v1627_v18 }
 0x52b   :  { %861 = vmatprep.subr.bf16.mxu0 %v1583_v11  ;;  %1337 = vmatprep.subr.bf16.mxu1 %v1496_v1 }
 0x52e   :  { %862 = vmatpush1.bf16.msra.mxu0 %v1596_v13  ;;  %1338 = vmatpush3.bf16.msra.mxu1 %v1646_v21 }
 0x52f   :  { %863 = vmatprep.subr.bf16.mxu0 %v1602_v14  ;;  %1339 = vmatprep.subr.bf16.mxu1 %v1496_v1 }
 0x532   :  { %864 = vmatpush1.bf16.msra.mxu0 %v1615_v16  ;;  %1340 = vmatpush3.bf16.msra.mxu1 %v1665_v24 }
 0x533   :  { %865 = vmatprep.subr.bf16.mxu0 %v1621_v17  ;;  %1341 = vmatprep.subr.bf16.mxu1 %v1496_v1 }
 0x536   :  { %866 = vmatpush1.bf16.msra.mxu0 %v1634_v19  ;;  %1342 = vmatpush3.bf16.msra.mxu1 %v1676_v26 }
 0x537   :  { %867 = vmatprep.subr.bf16.mxu0 %v1640_v20  ;;  %1343 = vmatprep.subr.bf16.mxu1 %v1496_v1 }
 0x53a   :  { %868 = vmatpush1.bf16.msra.mxu0 %v1653_v22  ;;  %1344 = vmatpush3.bf16.msra.mxu1 %v1686_v27 }
 0x53b   :  { %961 = vmatprep.subr.bf16.mxu0 %v1527_v0  ;;  %1349 = vmatprep.subr.bf16.mxu1 %v1496_v1 }
 0x5dd   :  { %v779_v4 = vpop.f32.mrf.mxu0  ;;  %v820_v5 = vpop.f32.mrf.mxu1 }
 0x5de   :  { %v780_v6 = vadd.f32 %v779_v4, %v1726_v32  ;;  %v821_v58 = vadd.f32 %v820_v5, %v1738_v54 }
 0x5df   :  { %v781_v7 = vpop.f32.mrf.mxu0  ;;  %v1327_v8 = vpop.f32.mrf.mxu1 }
 0x5e0   :  { %v826_v9 = vadd.f32 %v1119_v3, %v780_v6  ;;  %v782_v0 = vadd.f32 %v781_v7, %v1732_v41  ;;  %v1127_v6 = vld [vmem:[%s2124_s0 + $0xa0] sm:$0xff] }
 0x5e1   :  { %v783_v10 = vpop.f32.mrf.mxu0  ;;  %v823_v11 = vpop.f32.mrf.mxu1 }
 0x5e2   :  { %v1122_v12 = vmul.f32 -1.442695, %v826_v9  ;;  %v833_v52 = vadd.f32 %v1120_v51, %v782_v0  ;;  %v1131_v51 = vld [vmem:[%s2124_s0 + $0xa8] sm:$0xff] }
 0x5e3   :  { %v784_v13 = vpop.f32.mrf.mxu0  ;;  %v1328_v14 = vpop.f32.mrf.mxu1 }
 0x5e4   :  { %1454 = vpow2.f32 %v1122_v12  ;;  %v1123_v53 = vmul.f32 -1.442695, %v833_v52 }
 0x5e6   :  { %1456 = vpow2.f32 %v1123_v53 }
 0x5f1   :  { %v1455_v55 = vpop.eup %1454 }
 0x5f2   :  { %v830_v56 = vadd.f32 1.0, %v1455_v55 }
 0x5f3   :  { %v1457_v57 = vpop.eup %1456 }
 0x5f4   :  { %1458 = vrcp.f32 %v830_v56  ;;  %v837_v63 = vadd.f32 1.0, %v1457_v57 }
 0x601   :  { %v1459_v59 = vpop.eup %1458 }
 0x602   :  { %v840_v61 = vmul.f32 %v1459_v59, %v821_v58 }
 0x604   :  { %v841_v62 = vadd.f32 %v1121_v60, %v840_v61 }
 0x606   :  { %1460 = vtanh.f32 %v841_v62 }
 0x607   :  { %1462 = vrcp.f32 %v837_v63 }
 0x613   :  { %v1461_v25 = vpop.eup %1460 }
 0x614   :  { %v843_v28 = vsub.f32 %v1969_v49, %v1461_v25  ;;  %v1463_v29 = vpop.eup %1462 }
 0x616   :  { %v844_v30 = vmul.f32 %v1463_v29, %v843_v28  ;;  %v1132_v28 = vld [vmem:[%s2124_s0 + $0xb0] sm:$0xff] }
 0x618   :  { %v2025_v23 = vadd.f32 %v1461_v25, %v844_v30 }
 0x61a   :  { %1124 = vst [vmem:[%s2125_s4 + $0x28] sm:$0xff] %v2025_v23  ;;  %v852_v31 = vpack.c.bf16 %v2025_v23, %v2025_v23 }
 0x61c   :  { %886 = vmatmul.mubr.bf16.vlgmr.msra.gmra.mxu0 %v852_v31  ;;  %1346 = vmatmul.mubr.bf16.vlgmr.msra.gmra.mxu1 %v852_v31 }
 0x61d   :  { %962 = vmatpush1.bf16.msra.mxu0 %v1484_v33  ;;  %1350 = vmatpush3.bf16.msra.mxu1 %v1485_v34 }
 0x61e   :  { %963 = vmatprep.subr.bf16.mxu0 %v1486_v35  ;;  %1351 = vmatprep.subr.bf16.mxu1 %v1496_v1  ;;  %v1133_v35 = vld [vmem:[%s2124_s0 + $0xb8] sm:$0xff] }
 0x61f   :  { %993 = vmatprep.mubr.bf16.mxu0 %v1497_v2  ;;  %1365 = vmatprep.mubr.msk.bf16.mxu1 %vm1498_vm0, %v1496_v1  ;;  %v1490_v2 = vld [vmem:[%s2121_s2 + $0x78] ss:$12 sps:$4 sm:$0xff]  }
 0x621   :  { %964 = vmatpush1.bf16.msra.mxu0 %v1487_v36  ;;  %1352 = vmatpush3.bf16.msra.mxu1 %v1488_v37 }
 0x622   :  { %965 = vmatprep.subr.bf16.mxu0 %v1489_v38  ;;  %1353 = vmatprep.subr.bf16.mxu1 %v1496_v1 }
 0x625   :  { %966 = vmatpush1.bf16.msra.mxu0 %v1490_v2  ;;  %1354 = vmatpush3.bf16.msra.mxu1 %v1608_v15  ;;  %v1494_v15 = vld [vmem:[%s2121_s2 + $0x48] ss:$12 sps:$4 sm:$0xff]  }
 0x626   :  { %967 = vmatprep.subr.bf16.mxu0 %v1491_v39  ;;  %1355 = vmatprep.subr.bf16.mxu1 %v1496_v1 }
 0x629   :  { %968 = vmatpush1.bf16.msra.mxu0 %v1492_v40  ;;  %1356 = vmatpush3.bf16.msra.mxu1 %v1627_v18 }
 0x62a   :  { %969 = vmatprep.subr.bf16.mxu0 %v1493_v42  ;;  %1357 = vmatprep.subr.bf16.mxu1 %v1496_v1 }
 0x62d   :  { %970 = vmatpush1.bf16.msra.mxu0 %v1494_v15  ;;  %1358 = vmatpush3.bf16.msra.mxu1 %v1646_v21 }
 0x62e   :  { %971 = vmatprep.subr.bf16.mxu0 %v1495_v43  ;;  %1359 = vmatprep.subr.bf16.mxu1 %v1496_v1 }
 0x631   :  { %972 = vmatpush1.bf16.msra.mxu0 %v1615_v16  ;;  %1360 = vmatpush3.bf16.msra.mxu1 %v1665_v24  ;;  %v1125_v16 = vld [vmem:[%s2124_s0 + $0x90] sm:$0xff] }
 0x632   :  { %973 = vmatprep.subr.bf16.mxu0 %v1621_v17  ;;  %1361 = vmatprep.subr.bf16.mxu1 %v1496_v1 }
 0x635   :  { %974 = vmatpush1.bf16.msra.mxu0 %v1634_v19  ;;  %1362 = vmatpush3.bf16.msra.mxu1 %v1676_v26 }
 0x636   :  { %975 = vmatprep.subr.bf16.mxu0 %v1640_v20  ;;  %1363 = vmatprep.subr.bf16.mxu1 %v1496_v1 }
 0x639   :  { %976 = vmatpush1.bf16.msra.mxu0 %v1653_v22  ;;  %1364 = vmatpush3.bf16.msra.mxu1 %v1686_v27  ;;  %v1126_v27 = vld [vmem:[%s2124_s0 + $0x98] sm:$0xff] }
 0x6dc   :  { %v887_v18 = vpop.f32.mrf.mxu0  ;;  %v928_v17 = vpop.f32.mrf.mxu1 }
 0x6dd   :  { %v888_v21 = vadd.f32 %v887_v18, %v1726_v32  ;;  %v929_v4 = vadd.f32 %v928_v17, %v1738_v54 }
 0x6de   :  { %v889_v24 = vpop.f32.mrf.mxu0  ;;  %v1347_v19 = vpop.f32.mrf.mxu1 }
 0x6df   :  { %v934_v44 = vadd.f32 %v1125_v16, %v888_v21  ;;  %v890_v22 = vadd.f32 %v889_v24, %v1732_v41 }
 0x6e0   :  { %v891_v26 = vpop.f32.mrf.mxu0  ;;  %v931_v45 = vpop.f32.mrf.mxu1 }
 0x6e1   :  { %v1128_v20 = vmul.f32 -1.442695, %v934_v44  ;;  %v941_v47 = vadd.f32 %v1126_v27, %v890_v22 }
 0x6e2   :  { %v892_v46 = vpop.f32.mrf.mxu0  ;;  %v1348_v1 = vpop.f32.mrf.mxu1 }
 0x6e3   :  { %1464 = vpow2.f32 %v1128_v20  ;;  %v1129_v48 = vmul.f32 -1.442695, %v941_v47 }
 0x6e5   :  { %1466 = vpow2.f32 %v1129_v48 }
 0x6f0   :  { %v1465_v49 = vpop.eup %1464 }
 0x6f1   :  { %v938_v50 = vadd.f32 1.0, %v1465_v49 }
 0x6f2   :  { %v1467_v3 = vpop.eup %1466 }
 0x6f3   :  { %1468 = vrcp.f32 %v938_v50  ;;  %v945_v9 = vadd.f32 1.0, %v1467_v3 }
 0x700   :  { %v1469_v5 = vpop.eup %1468 }
 0x701   :  { %v948_v7 = vmul.f32 %v1469_v5, %v929_v4 }
 0x703   :  { %v949_v8 = vadd.f32 %v1127_v6, %v948_v7 }
 0x705   :  { %1470 = vtanh.f32 %v949_v8 }
 0x706   :  { %1472 = vrcp.f32 %v945_v9 }
 0x712   :  { %v1471_v10 = vpop.eup %1470 }
 0x713   :  { %v951_v11 = vsub.f32 %v2025_v23, %v1471_v10  ;;  %v1473_v12 = vpop.eup %1472 }
 0x715   :  { %v952_v13 = vmul.f32 %v1473_v12, %v951_v11 }
 0x717   :  { %v953_v14 = vadd.f32 %v1471_v10, %v952_v13 }
 0x719   :  { %1130 = vst [vmem:[%s2125_s4 + $0x30] sm:$0xff] %v953_v14  ;;  %v960_v0 = vpack.c.bf16 %v953_v14, %v953_v14 }
 0x71b   :  { %994 = vmatmul.mubr.bf16.vlgmr.msra.gmra.mxu0 %v960_v0  ;;  %1366 = vmatmul.mubr.bf16.vlgmr.msra.gmra.mxu1 %v960_v0 }
 0x7db   :  { %v995_v52 = vpop.f32.mrf.mxu0  ;;  %v1036_v53 = vpop.f32.mrf.mxu1 }
 0x7dc   :  { %v996_v55 = vadd.f32 %v995_v52, %v1726_v32  ;;  %v1037_v33 = vadd.f32 %v1036_v53, %v1738_v54 }
 0x7dd   :  { %v997_v56 = vpop.f32.mrf.mxu0  ;;  %v1367_v57 = vpop.f32.mrf.mxu1 }
 0x7de   :  { %v1042_v58 = vadd.f32 %v1131_v51, %v996_v55  ;;  %v998_v25 = vadd.f32 %v997_v56, %v1732_v41 }
 0x7df   :  { %v999_v59 = vpop.f32.mrf.mxu0  ;;  %v1039_v60 = vpop.f32.mrf.mxu1 }
 0x7e0   :  { %v1134_v61 = vmul.f32 -1.442695, %v1042_v58  ;;  %v1049_v29 = vadd.f32 %v1132_v28, %v998_v25 }
 0x7e1   :  { %v1000_v62 = vpop.f32.mrf.mxu0  ;;  %v1368_v63 = vpop.f32.mrf.mxu1 }
 0x7e2   :  { %1474 = vpow2.f32 %v1134_v61  ;;  %v1135_v30 = vmul.f32 -1.442695, %v1049_v29 }
 0x7e4   :  { %1476 = vpow2.f32 %v1135_v30 }
 0x7ef   :  { %v1475_v23 = vpop.eup %1474 }
 0x7f0   :  { %v1046_v31 = vadd.f32 1.0, %v1475_v23 }
 0x7f1   :  { %v1477_v32 = vpop.eup %1476 }
 0x7f2   :  { %1478 = vrcp.f32 %v1046_v31  ;;  %v1053_v37 = vadd.f32 1.0, %v1477_v32 }
 0x7ff   :  { %v1479_v34 = vpop.eup %1478 }
 0x800   :  { %v1056_v36 = vmul.f32 %v1479_v34, %v1037_v33 }
 0x802   :  { %v1057_v41 = vadd.f32 %v1133_v35, %v1056_v36 }
 0x804   :  { %1480 = vtanh.f32 %v1057_v41 }
 0x805   :  { %1482 = vrcp.f32 %v1053_v37 }
 0x811   :  { %v1481_v38 = vpop.eup %1480 }
 0x812   :  { %v1059_v2 = vsub.f32 %v953_v14, %v1481_v38  ;;  %v1483_v39 = vpop.eup %1482 }
 0x814   :  { %v1060_v40 = vmul.f32 %v1483_v39, %v1059_v2 }
 0x816   :  { %v1061_v42 = vadd.f32 %v1481_v38, %v1060_v40 }
 0x818   :  { %1136 = vst [vmem:[%s2125_s4 + $0x38] sm:$0xff] %v1061_v42 }

</bundles_post_ra>
